<compile_context>
chip_gen: v7x
topology: tpu7x:2x2x1
jax: 0.10.0
libtpu: 0.0.40
codegen_flags: <defaults>
</compile_context>

<pallas_src>
import math

import jax
import jax.numpy as jnp
from jax import lax
from jax.experimental import pallas as pl
from jax.experimental.pallas import tpu as pltpu


def _round_up(n, m):
    return ((n + m - 1) // m) * m


def lstm_kernel(x_ref, w_ref, lin_ref, out_ref):
    # x_ref:   (T*Bp, I)        time-major rows (row = t*Bp + b), batch zero-padded
    # w_ref:   (IP + 8 + HP, 4*HP) rows [0:I) = W_ih, row IP = bias, rows [IP+8:) = W_hh
    #                              columns are gate-major (i|f|o|g), each gate HP lanes
    # lin_ref: (O + 1, HP)      rows [0:O) = W_lin (transposed), row O lanes [0:O) = b_lin
    # out_ref: (Bp, O)
    TBp, I = x_ref.shape
    Bp, O = out_ref.shape
    T = TBp // Bp
    rows, fourHP = w_ref.shape
    HP = fourHP // 4
    IP = rows - 8 - HP

    bias = w_ref[IP:IP + 1, :]                  # (1, 4HP)  sublane-aligned row block
    whh = w_ref[IP + 8:IP + 8 + HP, :]          # (HP, 4HP) sublane-aligned, MXU-resident
    wih = w_ref[0:I, :]                         # (I, 4HP)

    x = x_ref[...]                              # (TBp, I)

    # ---- Hoisted input projection (out of the recurrence). ----
    # With I < 8 the MXU contraction dim would be >94% zero padding; do it on
    # the VPU as broadcast multiplies instead and keep the MXU free.
    if I < 8:
        xw = x[:, 0:1] * wih[0:1, :] + bias     # (TBp, 4HP)
        for i in range(1, I):
            xw = xw + x[:, i:i + 1] * wih[i:i + 1, :]
    else:
        xw = jnp.dot(x, wih, preferred_element_type=jnp.float32) + bias

    # ---- Recurrence: one MXU matmul per step, h/c carried as values. ----
    h = jnp.zeros((Bp, HP), jnp.float32)
    c = jnp.zeros((Bp, HP), jnp.float32)

    def step(h, c, pre_x):
        pre = pre_x + jnp.dot(h, whh, preferred_element_type=jnp.float32)  # (Bp, 4HP)
        sig = jax.nn.sigmoid(pre[:, :3 * HP])   # fused sigmoid over aligned [i|f|o]
        i_g = sig[:, :HP]
        f_g = sig[:, HP:2 * HP]
        o_g = sig[:, 2 * HP:3 * HP]
        g_g = jnp.tanh(pre[:, 3 * HP:])         # tanh over aligned g slab
        c_n = f_g * c + i_g * g_g
        h_n = o_g * jnp.tanh(c_n)
        return h_n, c_n

    if T <= 32:
        # Full unroll: small static T, maximum LLO scheduling visibility.
        for t in range(T):
            h, c = step(h, c, xw[t * Bp:(t + 1) * Bp, :])   # Bp-aligned slices
    else:
        # Bounded-unroll loop for long sequences (caps vreg pressure / compile time).
        def body(t, carry):
            h_c, c_c = carry
            pre_x = lax.dynamic_slice_in_dim(xw, t * Bp, Bp, axis=0)
            return step(h_c, c_c, pre_x)
        h, c = lax.fori_loop(0, T, body, (h, c), unroll=4)

    # ---- Output linear on the last hidden state. ----
    lin_w = lin_ref[0:O, :]                     # (O, HP), zero-padded lanes beyond H
    if O == 1:
        # N=1 matmul would waste a full MXU fill/drain; VPU multiply + lane reduce.
        out = jnp.sum(h * lin_w, axis=-1, keepdims=True) + lin_ref[O:O + 1, 0:1]
    else:
        out = (jnp.einsum('bh,oh->bo', h, lin_w,
                          preferred_element_type=jnp.float32)
               + lin_ref[O:O + 1, 0:O])
    out_ref[...] = out


def prepare_lstm_params(w_ih, w_hh, b_ih, b_hh, w_lin, b_lin):
    """Pack PyTorch-layout params into two pre-padded kernel slabs.

    PyTorch layouts: w_ih (4H, I), w_hh (4H, H), b_ih/b_hh (4H,) with gate order
    (i, f, g, o); w_lin (O, H), b_lin (O,).
    """
    fourH, I = w_ih.shape
    H = fourH // 4
    O = w_lin.shape[0]
    HP = _round_up(H, 128)       # per-gate lane padding
    IP = _round_up(I, 8)
    assert O <= HP, "output_size larger than padded hidden not supported"

    gate_order = (0, 1, 3, 2)    # PyTorch (i,f,g,o) -> kernel (i,f,o,g)

    def fuse(m):                 # (4H, X) -> (X, 4*HP), per-gate lane padded
        gates = [m[g * H:(g + 1) * H] for g in gate_order]
        gates = [jnp.pad(g, ((0, HP - H), (0, 0))) for g in gates]
        return jnp.concatenate(gates, axis=0).T

    wih_f = fuse(w_ih)                                           # (I, 4HP)
    whh_f = jnp.pad(fuse(w_hh), ((0, HP - H), (0, 0)))           # (HP, 4HP)

    b_sum = b_ih + b_hh
    bias_f = jnp.concatenate(
        [jnp.pad(b_sum[g * H:(g + 1) * H], (0, HP - H)) for g in gate_order]
    ).reshape(1, 4 * HP)                                         # (1, 4HP)

    w_slab = jnp.concatenate([
        jnp.pad(wih_f, ((0, IP - I), (0, 0))),    # rows [0:IP)
        jnp.pad(bias_f, ((0, 7), (0, 0))),        # rows [IP:IP+8), bias at row IP
        whh_f,                                    # rows [IP+8:IP+8+HP)
    ], axis=0).astype(jnp.float32)                # (IP + 8 + HP, 4HP)

    lin_w = jnp.pad(w_lin, ((0, 0), (0, HP - H)))                # (O, HP)
    lin_b_row = jnp.pad(b_lin.reshape(1, O), ((0, 0), (0, HP - O)))  # (1, HP)
    lin_slab = jnp.concatenate([lin_w, lin_b_row], axis=0).astype(jnp.float32)

    return w_slab, lin_slab


def lstm_forward(x, w_slab, lin_slab):
    """x: (B, T, I) float32 (batch_first). Returns (B, O) float32."""
    B, T, I = x.shape
    O = lin_slab.shape[0] - 1
    Bp = _round_up(B, 8)

    # Pad batch to the sublane granule, time-major flatten.
    x_p = jnp.pad(x.astype(jnp.float32), ((0, Bp - B), (0, 0), (0, 0)))
    x_flat = jnp.transpose(x_p, (1, 0, 2)).reshape(T * Bp, I)

    vmem = pltpu.MemorySpace.VMEM
    out = pl.pallas_call(
        lstm_kernel,
        out_shape=jax.ShapeDtypeStruct((Bp, O), jnp.float32),
        in_specs=[pl.BlockSpec(memory_space=vmem)] * 3,
        out_specs=pl.BlockSpec(memory_space=vmem),
        compiler_params=pltpu.CompilerParams(
            vmem_limit_bytes=32 * 1024 * 1024),
    )(x_flat, w_slab, lin_slab)
    return out[:B]
    # TODO(synk): for large T*B*H, add a time-chunked grid (BlockSpec over the
    # activation stream, h/c in VMEM scratch) instead of keeping xw fully resident.


def lstm_reference(x, w_ih, w_hh, b_ih, b_hh, w_lin, b_lin):
    """Pure-JAX reference with PyTorch layouts / gate order (i, f, g, o)."""
    B, T, I = x.shape
    H = w_hh.shape[1]
    b = b_ih + b_hh

    def step(carry, x_t):
        h, c = carry
        pre = x_t @ w_ih.T + h @ w_hh.T + b
        i = jax.nn.sigmoid(pre[:, 0:H])
        f = jax.nn.sigmoid(pre[:, H:2 * H])
        g = jnp.tanh(pre[:, 2 * H:3 * H])
        o = jax.nn.sigmoid(pre[:, 3 * H:4 * H])
        c = f * c + i * g
        h = o * jnp.tanh(c)
        return (h, c), None

    h0 = jnp.zeros((B, H), jnp.float32)
    c0 = jnp.zeros((B, H), jnp.float32)
    (h_T, _), _ = lax.scan(step, (h0, c0), jnp.transpose(x, (1, 0, 2)))
    return h_T @ w_lin.T + b_lin


if __name__ == "__main__":
    # Shapes matching the module defaults: input_size=1, hidden=50, output=1.
    B, T, I, H, O = 2, 8, 1, 50, 1

    key = jax.random.PRNGKey(0)
    k_x, k_wih, k_whh, k_bih, k_bhh, k_wl, k_bl = jax.random.split(key, 7)

    s = 1.0 / math.sqrt(H)   # PyTorch default U(-1/sqrt(H), 1/sqrt(H))
    x = jax.random.normal(k_x, (B, T, I), dtype=jnp.float32)

    # PyTorch-layout parameters, gate order (i, f, g, o).
    w_ih = jax.random.uniform(k_wih, (4 * H, I), jnp.float32, -s, s)
    w_hh = jax.random.uniform(k_whh, (4 * H, H), jnp.float32, -s, s)
    b_ih = jax.random.uniform(k_bih, (4 * H,), jnp.float32, -s, s)
    b_hh = jax.random.uniform(k_bhh, (4 * H,), jnp.float32, -s, s)
    w_lin = jax.random.uniform(k_wl, (O, H), jnp.float32, -s, s)
    b_lin = jax.random.uniform(k_bl, (O,), jnp.float32, -s, s)

    w_slab, lin_slab = prepare_lstm_params(w_ih, w_hh, b_ih, b_hh, w_lin, b_lin)

    out = jax.block_until_ready(lstm_forward(x, w_slab, lin_slab))
    ref = jax.block_until_ready(
        lstm_reference(x, w_ih, w_hh, b_ih, b_hh, w_lin, b_lin))

    assert out.shape == (B, O), out.shape
    assert jnp.allclose(out, ref, atol=1e-5, rtol=1e-5), (out, ref)

    print("KERNEL_OK")
</pallas_src>

<mosaic_0001>
module attributes {stable_mosaic.version = 11 : i64} {
  func.func @lstm_kernel(%arg0: memref<64x1xf32, #tpu.memory_space<vmem>>, %arg1: memref<144x512xf32, #tpu.memory_space<vmem>>, %arg2: memref<2x128xf32, #tpu.memory_space<vmem>>, %arg3: memref<8x1xf32, #tpu.memory_space<vmem>>) attributes {dimension_semantics = [], scalar_prefetch = 0 : i64, scratch_operands = 0 : i64, tpu.core_type = #tpu.core_type<tc>} {
    %c8 = arith.constant 8 : index
    %c0 = arith.constant 0 : index
    %0 = vector.load %arg1[%c8, %c0] : memref<144x512xf32, #tpu.memory_space<vmem>>, vector<1x512xf32>
    %c16 = arith.constant 16 : index
    %c0_0 = arith.constant 0 : index
    %1 = vector.load %arg1[%c16, %c0_0] : memref<144x512xf32, #tpu.memory_space<vmem>>, vector<128x512xf32>
    %c0_1 = arith.constant 0 : index
    %c0_2 = arith.constant 0 : index
    %2 = vector.load %arg1[%c0_1, %c0_2] : memref<144x512xf32, #tpu.memory_space<vmem>>, vector<1x512xf32>
    %c0_3 = arith.constant 0 : index
    %c0_4 = arith.constant 0 : index
    %3 = vector.load %arg0[%c0_3, %c0_4] : memref<64x1xf32, #tpu.memory_space<vmem>>, vector<64x1xf32>
    %4 = vector.broadcast %3 : vector<64x1xf32> to vector<64x512xf32>
    %5 = vector.broadcast %2 : vector<1x512xf32> to vector<64x512xf32>
    %6 = arith.mulf %4, %5 : vector<64x512xf32>
    %7 = vector.broadcast %0 : vector<1x512xf32> to vector<64x512xf32>
    %8 = arith.addf %6, %7 : vector<64x512xf32>
    %cst = arith.constant 0.000000e+00 : f32
    %9 = vector.broadcast %cst : f32 to vector<8x128xf32>
    %cst_5 = arith.constant 0.000000e+00 : f32
    %10 = vector.broadcast %cst_5 : f32 to vector<8x128xf32>
    %11 = vector.extract_strided_slice %8 {offsets = [0, 0], sizes = [8, 512], strides = [1, 1]} : vector<64x512xf32> to vector<8x512xf32>
    %cst_6 = arith.constant dense<0.000000e+00> : vector<8x512xf32>
    %12 = tpu.matmul %9, %1, %cst_6 {dimension_numbers = #tpu.dot_dimension_numbers<[1], [0], [0], [1], [0, 0, 1, 1], [], []>} : vector<8x128xf32>, vector<128x512xf32>, vector<8x512xf32> -> vector<8x512xf32>
    %13 = arith.addf %11, %12 : vector<8x512xf32>
    %14 = vector.extract_strided_slice %13 {offsets = [0, 0], sizes = [8, 384], strides = [1, 1]} : vector<8x512xf32> to vector<8x384xf32>
    %15 = arith.negf %14 : vector<8x384xf32>
    %16 = math.exp %15 : vector<8x384xf32>
    %cst_7 = arith.constant 1.000000e+00 : f32
    %17 = vector.broadcast %cst_7 : f32 to vector<8x384xf32>
    %18 = arith.addf %17, %16 : vector<8x384xf32>
    %19 = arith.divf %17, %18 : vector<8x384xf32>
    %20 = vector.extract_strided_slice %19 {offsets = [0, 0], sizes = [8, 128], strides = [1, 1]} : vector<8x384xf32> to vector<8x128xf32>
    %21 = vector.extract_strided_slice %19 {offsets = [0, 128], sizes = [8, 128], strides = [1, 1]} : vector<8x384xf32> to vector<8x128xf32>
    %22 = vector.extract_strided_slice %19 {offsets = [0, 256], sizes = [8, 128], strides = [1, 1]} : vector<8x384xf32> to vector<8x128xf32>
    %23 = vector.extract_strided_slice %13 {offsets = [0, 384], sizes = [8, 128], strides = [1, 1]} : vector<8x512xf32> to vector<8x128xf32>
    %24 = math.tanh %23 : vector<8x128xf32>
    %25 = arith.mulf %21, %10 : vector<8x128xf32>
    %26 = arith.mulf %20, %24 : vector<8x128xf32>
    %27 = arith.addf %25, %26 : vector<8x128xf32>
    %28 = math.tanh %27 : vector<8x128xf32>
    %29 = arith.mulf %22, %28 : vector<8x128xf32>
    %30 = vector.extract_strided_slice %8 {offsets = [8, 0], sizes = [8, 512], strides = [1, 1]} : vector<64x512xf32> to vector<8x512xf32>
    %cst_8 = arith.constant dense<0.000000e+00> : vector<8x512xf32>
    %31 = tpu.matmul %29, %1, %cst_8 {dimension_numbers = #tpu.dot_dimension_numbers<[1], [0], [0], [1], [0, 0, 1, 1], [], []>} : vector<8x128xf32>, vector<128x512xf32>, vector<8x512xf32> -> vector<8x512xf32>
    %32 = arith.addf %30, %31 : vector<8x512xf32>
    %33 = vector.extract_strided_slice %32 {offsets = [0, 0], sizes = [8, 384], strides = [1, 1]} : vector<8x512xf32> to vector<8x384xf32>
    %34 = arith.negf %33 : vector<8x384xf32>
    %35 = math.exp %34 : vector<8x384xf32>
    %cst_9 = arith.constant 1.000000e+00 : f32
    %36 = vector.broadcast %cst_9 : f32 to vector<8x384xf32>
    %37 = arith.addf %36, %35 : vector<8x384xf32>
    %38 = arith.divf %36, %37 : vector<8x384xf32>
    %39 = vector.extract_strided_slice %38 {offsets = [0, 0], sizes = [8, 128], strides = [1, 1]} : vector<8x384xf32> to vector<8x128xf32>
    %40 = vector.extract_strided_slice %38 {offsets = [0, 128], sizes = [8, 128], strides = [1, 1]} : vector<8x384xf32> to vector<8x128xf32>
    %41 = vector.extract_strided_slice %38 {offsets = [0, 256], sizes = [8, 128], strides = [1, 1]} : vector<8x384xf32> to vector<8x128xf32>
    %42 = vector.extract_strided_slice %32 {offsets = [0, 384], sizes = [8, 128], strides = [1, 1]} : vector<8x512xf32> to vector<8x128xf32>
    %43 = math.tanh %42 : vector<8x128xf32>
    %44 = arith.mulf %40, %27 : vector<8x128xf32>
    %45 = arith.mulf %39, %43 : vector<8x128xf32>
    %46 = arith.addf %44, %45 : vector<8x128xf32>
    %47 = math.tanh %46 : vector<8x128xf32>
    %48 = arith.mulf %41, %47 : vector<8x128xf32>
    %49 = vector.extract_strided_slice %8 {offsets = [16, 0], sizes = [8, 512], strides = [1, 1]} : vector<64x512xf32> to vector<8x512xf32>
    %cst_10 = arith.constant dense<0.000000e+00> : vector<8x512xf32>
    %50 = tpu.matmul %48, %1, %cst_10 {dimension_numbers = #tpu.dot_dimension_numbers<[1], [0], [0], [1], [0, 0, 1, 1], [], []>} : vector<8x128xf32>, vector<128x512xf32>, vector<8x512xf32> -> vector<8x512xf32>
    %51 = arith.addf %49, %50 : vector<8x512xf32>
    %52 = vector.extract_strided_slice %51 {offsets = [0, 0], sizes = [8, 384], strides = [1, 1]} : vector<8x512xf32> to vector<8x384xf32>
    %53 = arith.negf %52 : vector<8x384xf32>
    %54 = math.exp %53 : vector<8x384xf32>
    %cst_11 = arith.constant 1.000000e+00 : f32
    %55 = vector.broadcast %cst_11 : f32 to vector<8x384xf32>
    %56 = arith.addf %55, %54 : vector<8x384xf32>
    %57 = arith.divf %55, %56 : vector<8x384xf32>
    %58 = vector.extract_strided_slice %57 {offsets = [0, 0], sizes = [8, 128], strides = [1, 1]} : vector<8x384xf32> to vector<8x128xf32>
    %59 = vector.extract_strided_slice %57 {offsets = [0, 128], sizes = [8, 128], strides = [1, 1]} : vector<8x384xf32> to vector<8x128xf32>
    %60 = vector.extract_strided_slice %57 {offsets = [0, 256], sizes = [8, 128], strides = [1, 1]} : vector<8x384xf32> to vector<8x128xf32>
    %61 = vector.extract_strided_slice %51 {offsets = [0, 384], sizes = [8, 128], strides = [1, 1]} : vector<8x512xf32> to vector<8x128xf32>
    %62 = math.tanh %61 : vector<8x128xf32>
    %63 = arith.mulf %59, %46 : vector<8x128xf32>
    %64 = arith.mulf %58, %62 : vector<8x128xf32>
    %65 = arith.addf %63, %64 : vector<8x128xf32>
    %66 = math.tanh %65 : vector<8x128xf32>
    %67 = arith.mulf %60, %66 : vector<8x128xf32>
    %68 = vector.extract_strided_slice %8 {offsets = [24, 0], sizes = [8, 512], strides = [1, 1]} : vector<64x512xf32> to vector<8x512xf32>
    %cst_12 = arith.constant dense<0.000000e+00> : vector<8x512xf32>
    %69 = tpu.matmul %67, %1, %cst_12 {dimension_numbers = #tpu.dot_dimension_numbers<[1], [0], [0], [1], [0, 0, 1, 1], [], []>} : vector<8x128xf32>, vector<128x512xf32>, vector<8x512xf32> -> vector<8x512xf32>
    %70 = arith.addf %68, %69 : vector<8x512xf32>
    %71 = vector.extract_strided_slice %70 {offsets = [0, 0], sizes = [8, 384], strides = [1, 1]} : vector<8x512xf32> to vector<8x384xf32>
    %72 = arith.negf %71 : vector<8x384xf32>
    %73 = math.exp %72 : vector<8x384xf32>
    %cst_13 = arith.constant 1.000000e+00 : f32
    %74 = vector.broadcast %cst_13 : f32 to vector<8x384xf32>
    %75 = arith.addf %74, %73 : vector<8x384xf32>
    %76 = arith.divf %74, %75 : vector<8x384xf32>
    %77 = vector.extract_strided_slice %76 {offsets = [0, 0], sizes = [8, 128], strides = [1, 1]} : vector<8x384xf32> to vector<8x128xf32>
    %78 = vector.extract_strided_slice %76 {offsets = [0, 128], sizes = [8, 128], strides = [1, 1]} : vector<8x384xf32> to vector<8x128xf32>
    %79 = vector.extract_strided_slice %76 {offsets = [0, 256], sizes = [8, 128], strides = [1, 1]} : vector<8x384xf32> to vector<8x128xf32>
    %80 = vector.extract_strided_slice %70 {offsets = [0, 384], sizes = [8, 128], strides = [1, 1]} : vector<8x512xf32> to vector<8x128xf32>
    %81 = math.tanh %80 : vector<8x128xf32>
    %82 = arith.mulf %78, %65 : vector<8x128xf32>
    %83 = arith.mulf %77, %81 : vector<8x128xf32>
    %84 = arith.addf %82, %83 : vector<8x128xf32>
    %85 = math.tanh %84 : vector<8x128xf32>
    %86 = arith.mulf %79, %85 : vector<8x128xf32>
    %87 = vector.extract_strided_slice %8 {offsets = [32, 0], sizes = [8, 512], strides = [1, 1]} : vector<64x512xf32> to vector<8x512xf32>
    %cst_14 = arith.constant dense<0.000000e+00> : vector<8x512xf32>
    %88 = tpu.matmul %86, %1, %cst_14 {dimension_numbers = #tpu.dot_dimension_numbers<[1], [0], [0], [1], [0, 0, 1, 1], [], []>} : vector<8x128xf32>, vector<128x512xf32>, vector<8x512xf32> -> vector<8x512xf32>
    %89 = arith.addf %87, %88 : vector<8x512xf32>
    %90 = vector.extract_strided_slice %89 {offsets = [0, 0], sizes = [8, 384], strides = [1, 1]} : vector<8x512xf32> to vector<8x384xf32>
    %91 = arith.negf %90 : vector<8x384xf32>
    %92 = math.exp %91 : vector<8x384xf32>
    %cst_15 = arith.constant 1.000000e+00 : f32
    %93 = vector.broadcast %cst_15 : f32 to vector<8x384xf32>
    %94 = arith.addf %93, %92 : vector<8x384xf32>
    %95 = arith.divf %93, %94 : vector<8x384xf32>
    %96 = vector.extract_strided_slice %95 {offsets = [0, 0], sizes = [8, 128], strides = [1, 1]} : vector<8x384xf32> to vector<8x128xf32>
    %97 = vector.extract_strided_slice %95 {offsets = [0, 128], sizes = [8, 128], strides = [1, 1]} : vector<8x384xf32> to vector<8x128xf32>
    %98 = vector.extract_strided_slice %95 {offsets = [0, 256], sizes = [8, 128], strides = [1, 1]} : vector<8x384xf32> to vector<8x128xf32>
    %99 = vector.extract_strided_slice %89 {offsets = [0, 384], sizes = [8, 128], strides = [1, 1]} : vector<8x512xf32> to vector<8x128xf32>
    %100 = math.tanh %99 : vector<8x128xf32>
    %101 = arith.mulf %97, %84 : vector<8x128xf32>
    %102 = arith.mulf %96, %100 : vector<8x128xf32>
    %103 = arith.addf %101, %102 : vector<8x128xf32>
    %104 = math.tanh %103 : vector<8x128xf32>
    %105 = arith.mulf %98, %104 : vector<8x128xf32>
    %106 = vector.extract_strided_slice %8 {offsets = [40, 0], sizes = [8, 512], strides = [1, 1]} : vector<64x512xf32> to vector<8x512xf32>
    %cst_16 = arith.constant dense<0.000000e+00> : vector<8x512xf32>
    %107 = tpu.matmul %105, %1, %cst_16 {dimension_numbers = #tpu.dot_dimension_numbers<[1], [0], [0], [1], [0, 0, 1, 1], [], []>} : vector<8x128xf32>, vector<128x512xf32>, vector<8x512xf32> -> vector<8x512xf32>
    %108 = arith.addf %106, %107 : vector<8x512xf32>
    %109 = vector.extract_strided_slice %108 {offsets = [0, 0], sizes = [8, 384], strides = [1, 1]} : vector<8x512xf32> to vector<8x384xf32>
    %110 = arith.negf %109 : vector<8x384xf32>
    %111 = math.exp %110 : vector<8x384xf32>
    %cst_17 = arith.constant 1.000000e+00 : f32
    %112 = vector.broadcast %cst_17 : f32 to vector<8x384xf32>
    %113 = arith.addf %112, %111 : vector<8x384xf32>
    %114 = arith.divf %112, %113 : vector<8x384xf32>
    %115 = vector.extract_strided_slice %114 {offsets = [0, 0], sizes = [8, 128], strides = [1, 1]} : vector<8x384xf32> to vector<8x128xf32>
    %116 = vector.extract_strided_slice %114 {offsets = [0, 128], sizes = [8, 128], strides = [1, 1]} : vector<8x384xf32> to vector<8x128xf32>
    %117 = vector.extract_strided_slice %114 {offsets = [0, 256], sizes = [8, 128], strides = [1, 1]} : vector<8x384xf32> to vector<8x128xf32>
    %118 = vector.extract_strided_slice %108 {offsets = [0, 384], sizes = [8, 128], strides = [1, 1]} : vector<8x512xf32> to vector<8x128xf32>
    %119 = math.tanh %118 : vector<8x128xf32>
    %120 = arith.mulf %116, %103 : vector<8x128xf32>
    %121 = arith.mulf %115, %119 : vector<8x128xf32>
    %122 = arith.addf %120, %121 : vector<8x128xf32>
    %123 = math.tanh %122 : vector<8x128xf32>
    %124 = arith.mulf %117, %123 : vector<8x128xf32>
    %125 = vector.extract_strided_slice %8 {offsets = [48, 0], sizes = [8, 512], strides = [1, 1]} : vector<64x512xf32> to vector<8x512xf32>
    %cst_18 = arith.constant dense<0.000000e+00> : vector<8x512xf32>
    %126 = tpu.matmul %124, %1, %cst_18 {dimension_numbers = #tpu.dot_dimension_numbers<[1], [0], [0], [1], [0, 0, 1, 1], [], []>} : vector<8x128xf32>, vector<128x512xf32>, vector<8x512xf32> -> vector<8x512xf32>
    %127 = arith.addf %125, %126 : vector<8x512xf32>
    %128 = vector.extract_strided_slice %127 {offsets = [0, 0], sizes = [8, 384], strides = [1, 1]} : vector<8x512xf32> to vector<8x384xf32>
    %129 = arith.negf %128 : vector<8x384xf32>
    %130 = math.exp %129 : vector<8x384xf32>
    %cst_19 = arith.constant 1.000000e+00 : f32
    %131 = vector.broadcast %cst_19 : f32 to vector<8x384xf32>
    %132 = arith.addf %131, %130 : vector<8x384xf32>
    %133 = arith.divf %131, %132 : vector<8x384xf32>
    %134 = vector.extract_strided_slice %133 {offsets = [0, 0], sizes = [8, 128], strides = [1, 1]} : vector<8x384xf32> to vector<8x128xf32>
    %135 = vector.extract_strided_slice %133 {offsets = [0, 128], sizes = [8, 128], strides = [1, 1]} : vector<8x384xf32> to vector<8x128xf32>
    %136 = vector.extract_strided_slice %133 {offsets = [0, 256], sizes = [8, 128], strides = [1, 1]} : vector<8x384xf32> to vector<8x128xf32>
    %137 = vector.extract_strided_slice %127 {offsets = [0, 384], sizes = [8, 128], strides = [1, 1]} : vector<8x512xf32> to vector<8x128xf32>
    %138 = math.tanh %137 : vector<8x128xf32>
    %139 = arith.mulf %135, %122 : vector<8x128xf32>
    %140 = arith.mulf %134, %138 : vector<8x128xf32>
    %141 = arith.addf %139, %140 : vector<8x128xf32>
    %142 = math.tanh %141 : vector<8x128xf32>
    %143 = arith.mulf %136, %142 : vector<8x128xf32>
    %144 = vector.extract_strided_slice %8 {offsets = [56, 0], sizes = [8, 512], strides = [1, 1]} : vector<64x512xf32> to vector<8x512xf32>
    %cst_20 = arith.constant dense<0.000000e+00> : vector<8x512xf32>
    %145 = tpu.matmul %143, %1, %cst_20 {dimension_numbers = #tpu.dot_dimension_numbers<[1], [0], [0], [1], [0, 0, 1, 1], [], []>} : vector<8x128xf32>, vector<128x512xf32>, vector<8x512xf32> -> vector<8x512xf32>
    %146 = arith.addf %144, %145 : vector<8x512xf32>
    %147 = vector.extract_strided_slice %146 {offsets = [0, 0], sizes = [8, 384], strides = [1, 1]} : vector<8x512xf32> to vector<8x384xf32>
    %148 = arith.negf %147 : vector<8x384xf32>
    %149 = math.exp %148 : vector<8x384xf32>
    %cst_21 = arith.constant 1.000000e+00 : f32
    %150 = vector.broadcast %cst_21 : f32 to vector<8x384xf32>
    %151 = arith.addf %150, %149 : vector<8x384xf32>
    %152 = arith.divf %150, %151 : vector<8x384xf32>
    %153 = vector.extract_strided_slice %152 {offsets = [0, 0], sizes = [8, 128], strides = [1, 1]} : vector<8x384xf32> to vector<8x128xf32>
    %154 = vector.extract_strided_slice %152 {offsets = [0, 128], sizes = [8, 128], strides = [1, 1]} : vector<8x384xf32> to vector<8x128xf32>
    %155 = vector.extract_strided_slice %152 {offsets = [0, 256], sizes = [8, 128], strides = [1, 1]} : vector<8x384xf32> to vector<8x128xf32>
    %156 = vector.extract_strided_slice %146 {offsets = [0, 384], sizes = [8, 128], strides = [1, 1]} : vector<8x512xf32> to vector<8x128xf32>
    %157 = math.tanh %156 : vector<8x128xf32>
    %158 = arith.mulf %154, %141 : vector<8x128xf32>
    %159 = arith.mulf %153, %157 : vector<8x128xf32>
    %160 = arith.addf %158, %159 : vector<8x128xf32>
    %161 = math.tanh %160 : vector<8x128xf32>
    %162 = arith.mulf %155, %161 : vector<8x128xf32>
    %c0_22 = arith.constant 0 : index
    %c0_23 = arith.constant 0 : index
    %163 = vector.load %arg2[%c0_22, %c0_23] : memref<2x128xf32, #tpu.memory_space<vmem>>, vector<1x128xf32>
    %164 = vector.broadcast %163 : vector<1x128xf32> to vector<8x128xf32>
    %165 = arith.mulf %162, %164 : vector<8x128xf32>
    %cst_24 = arith.constant dense<0.000000e+00> : vector<8xf32>
    %166 = vector.multi_reduction <add>, %165, %cst_24 [1] : vector<8x128xf32> to vector<8xf32>
    %167 = vector.shape_cast %166 : vector<8xf32> to vector<8x1xf32>
    %c1 = arith.constant 1 : index
    %c0_25 = arith.constant 0 : index
    %168 = vector.load %arg2[%c1, %c0_25] : memref<2x128xf32, #tpu.memory_space<vmem>>, vector<1x1xf32>
    %169 = vector.broadcast %168 : vector<1x1xf32> to vector<8x1xf32>
    %170 = arith.addf %167, %169 : vector<8x1xf32>
    %c0_26 = arith.constant 0 : index
    %c0_27 = arith.constant 0 : index
    %171 = vector.load %arg3[%c0_26, %c0_27] : memref<8x1xf32, #tpu.memory_space<vmem>>, vector<8x1xf32>
    tpu.vector_store %arg3[%c0_26, %c0_27], %170 {strides = array<i32>} : memref<8x1xf32, #tpu.memory_space<vmem>>, vector<8x1xf32>,
    return
  }
}

</mosaic_0001>

<bundles_post_ra>
// kernel: tpu_custom_call.1
= control target key start
LH: loop header
LB: loop body
LE: loop exit
PB: predicated region body
PF: predicated region fallthrough
CT: control target
= control target key end

     0   :  { %8 = vsyncpa [#allocation3], 0  ;;  %s2327_s12 = smov [#allocation2]   ;;  %s2839_s0 = inlined_call_operand.vmem [shape: f32[64,1], index: 0, kind: input, shape index: {}]   ;;  %s2840_s1 = inlined_call_operand.hbm [shape: f32[144,512], index: 1, kind: input, shape index: {}]   ;;  %s2841_s2 = inlined_call_operand.vmem [shape: f32[2,128], index: 2, kind: input, shape index: {}]   ;;  %s2842_s3 = inlined_call_operand.vmem [shape: f32[8,1], index: 3, kind: output, shape index: {}]  }
   0x1   :  { %s16_s13 = sshll.u32 %s2327_s12, 4  ;;  %s2303_s16 = scalar_lea.hbm %s2840_s1, 9216  ;;  %s17_s13 = int_to_ptr.vmem [resolvable:$true] %s16_s13 }
   0x2   :  { %p2304_p0 = scmp.ne.s32.totalorder %s2840_s1, %s2303_s16  ;;  %p2307_p1 = scmp.lt.u32.totalorder %s2303_s16, %s2840_s1 }
   0x4   :  { %p2309_p2 = pnand %p2307_p1, %p2304_p0 }
   0x6   :  { %2312 = shalt.err (!%p2309_p2)
}
   0x7   :  { %s2313_s21 = scalar_lea.vmem %s17_s13, 9216  ;;  %p2318_p4 = scmp.lt.s32.totalorder %s17_s13, %s17_s13 }
   0x8   :  { %p2314_p3 = scmp.ne.s32.totalorder %s17_s13, %s2313_s21  ;;  %p2319_p5 = scmp.lt.s32.totalorder %s2313_s21, %s2313_s21 }
   0xa   :  { %p2320_p6 = por %p2319_p5, %p2318_p4 }
   0xc   :  { %p2321_p7 = pnand %p2320_p6, %p2314_p3 }
   0xe   :  { %2324 = shalt.err (!%p2321_p7)
}
   0xf   :  { %s2328_s22 = smov 512   ;;  %s2329_s23 = smov 32  }
  0x10   :  { %22 = dma.hbm_to_vmem [thread:$0]  %s2840_s1, 9216, %s17_s13, [#allocation3], %s2328_s22, %s2328_s22, %s2329_s23  }
  0x11   :  { %2325 = dma.done.wait [#allocation3], 9216  }
  0x12   :  { %2326 = vsyncadd [#allocation3], 4294958080  ;;  %v2330_v0 = vmov 0.0   ;;  %v2331_v1 = vmov 0   ;;  %v31_v2 = vld [vmem:[#allocation2 + $0x48] sm:$0xff]  ;;  %v33_v4 = vld [vmem:[#allocation2 + $0x58] sm:$0xff] }
  0x13   :  { %313 = vmatprep.mubr.f32.mxu0 %v2330_v0  ;;  %384 = vmatprep.mubr.f32.mxu1 %v2330_v0  ;;  %v35_v3 = vld [vmem:[#allocation2 + $0x68] sm:$0xff]  ;;  %v37_v6 = vld [vmem:[#allocation2 + $0x78] sm:$0xff]  ;;  %v30_v7 = vld [vmem:[#allocation2 + $0x40] sm:$0xff]  ;;  %vm1623_vm0 = vcmask 7168  }
  0x14   :  { %2173 = vset.pattern.permute.xlu0 %v2331_v1  ;;  %2174 = vset.pattern.permute.xlu1 %v2331_v1  ;;  %v2366_v5 = vpack.c.bf16 %v35_v3, %v31_v2  ;;  %v34_v8 = vld [vmem:[#allocation2 + $0x60] sm:$0xff]  ;;  %v2368_v9 = vpack.c.bf16 %v37_v6, %v33_v4  ;;  %v32_v11 = vld [vmem:[#allocation2 + $0x50] sm:$0xff]  ;;  %v39_v13 = vld [vmem:[#allocation2 + $0x88] sm:$0xff] }
  0x15   :  { %v2370_v10 = vpack.c.bf16 %v34_v8, %v30_v7  ;;  %v36_v12 = vld [vmem:[#allocation2 + $0x70] sm:$0xff]  ;;  %v43_v15 = vld [vmem:[#allocation2 + $0xa8] sm:$0xff]  ;;  %v41_v16 = vld [vmem:[#allocation2 + $0x98] sm:$0xff] }
  0x16   :  { %1657 = vmatprep.subr.bf16.mxu0 %v2366_v5  ;;  %v2373_v14 = vpack.c.bf16 %v36_v12, %v32_v11  ;;  %v45_v17 = vld [vmem:[#allocation2 + $0xb8] sm:$0xff]  ;;  %1689 = vmatprep.subr.bf16.mxu1 %v2368_v9  ;;  %v2377_v18 = vpack.c.bf16 %v43_v15, %v39_v13  ;;  %v38_v20 = vld [vmem:[#allocation2 + $0x80] sm:$0xff]  ;;  %v40_v22 = vld [vmem:[#allocation2 + $0x90] sm:$0xff] }
  0x17   :  { %1659 = vmatpush1.bf16.msra.mxu0 %v2370_v10  ;;  %v2379_v19 = vpack.c.bf16 %v45_v17, %v41_v16  ;;  %v42_v21 = vld [vmem:[#allocation2 + $0xa0] sm:$0xff]  ;;  %v44_v24 = vld [vmem:[#allocation2 + $0xb0] sm:$0xff]  ;;  %v47_v25 = vld [vmem:[#allocation2 + $0xc8] sm:$0xff] }
  0x18   :  { %1691 = vmatpush1.bf16.msra.mxu1 %v2373_v14  ;;  %v2382_v23 = vpack.c.bf16 %v42_v21, %v38_v20  ;;  %v51_v26 = vld [vmem:[#allocation2 + $0xe8] sm:$0xff]  ;;  %1661 = vmatprep.subr.bf16.mxu0 %v2377_v18  ;;  %v2386_v27 = vpack.c.bf16 %v44_v24, %v40_v22  ;;  %v49_v29 = vld [vmem:[#allocation2 + $0xd8] sm:$0xff]  ;;  %v46_v31 = vld [vmem:[#allocation2 + $0xc0] sm:$0xff] }
  0x19   :  { %1693 = vmatprep.subr.bf16.mxu1 %v2379_v19  ;;  %v2388_v28 = vpack.c.bf16 %v51_v26, %v47_v25  ;;  %v53_v30 = vld [vmem:[#allocation2 + $0xf8] sm:$0xff]  ;;  %v50_v33 = vld [vmem:[#allocation2 + $0xe0] sm:$0xff]  ;;  %v48_v34 = vld [vmem:[#allocation2 + $0xd0] sm:$0xff] }
  0x1a   :  { %v2390_v32 = vpack.c.bf16 %v53_v30, %v49_v29  ;;  %v52_v35 = vld [vmem:[#allocation2 + $0xf0] sm:$0xff]  ;;  %v2393_v36 = vpack.c.bf16 %v50_v33, %v46_v31  ;;  %v55_v37 = vld [vmem:[#allocation2 + $0x108] sm:$0xff]  ;;  %v57_v39 = vld [vmem:[#allocation2 + $0x118] sm:$0xff] }
  0x1b   :  { %1663 = vmatpush1.bf16.msra.mxu0 %v2382_v23  ;;  %v59_v38 = vld [vmem:[#allocation2 + $0x128] sm:$0xff]  ;;  %v2397_v40 = vpack.c.bf16 %v52_v35, %v48_v34  ;;  %v61_v42 = vld [vmem:[#allocation2 + $0x138] sm:$0xff]  ;;  %v54_v43 = vld [vmem:[#allocation2 + $0x100] sm:$0xff] }
  0x1c   :  { %1695 = vmatpush1.bf16.msra.mxu1 %v2386_v27  ;;  %1665 = vmatprep.subr.bf16.mxu0 %v2388_v28  ;;  %v2399_v41 = vpack.c.bf16 %v59_v38, %v55_v37  ;;  %v58_v44 = vld [vmem:[#allocation2 + $0x120] sm:$0xff]  ;;  %v2402_v45 = vpack.c.bf16 %v61_v42, %v57_v39  ;;  %v56_v46 = vld [vmem:[#allocation2 + $0x110] sm:$0xff]  ;;  %v63_v48 = vld [vmem:[#allocation2 + $0x148] sm:$0xff] }
  0x1d   :  { %1697 = vmatprep.subr.bf16.mxu1 %v2390_v32  ;;  %v60_v47 = vld [vmem:[#allocation2 + $0x130] sm:$0xff]  ;;  %v67_v49 = vld [vmem:[#allocation2 + $0x168] sm:$0xff]  ;;  %v65_v50 = vld [vmem:[#allocation2 + $0x158] sm:$0xff]  ;;  %v2405_v52 = vpack.c.bf16 %v58_v44, %v54_v43 }
  0x1e   :  { %v69_v51 = vld [vmem:[#allocation2 + $0x178] sm:$0xff]  ;;  %v2409_v53 = vpack.c.bf16 %v60_v47, %v56_v46  ;;  %v2411_v54 = vpack.c.bf16 %v67_v49, %v63_v48  ;;  %v62_v55 = vld [vmem:[#allocation2 + $0x140] sm:$0xff]  ;;  %v64_v57 = vld [vmem:[#allocation2 + $0x150] sm:$0xff] }
  0x1f   :  { %1667 = vmatpush1.bf16.msra.mxu0 %v2393_v36  ;;  %v66_v56 = vld [vmem:[#allocation2 + $0x160] sm:$0xff]  ;;  %v2414_v58 = vpack.c.bf16 %v69_v51, %v65_v50  ;;  %v68_v59 = vld [vmem:[#allocation2 + $0x170] sm:$0xff]  ;;  %v71_v60 = vld [vmem:[#allocation2 + $0x188] sm:$0xff] }
  0x20   :  { %1699 = vmatpush1.bf16.msra.mxu1 %v2397_v40  ;;  %1669 = vmatprep.subr.bf16.mxu0 %v2399_v41  ;;  %v75_v61 = vld [vmem:[#allocation2 + $0x1a8] sm:$0xff]  ;;  %v73_v62 = vld [vmem:[#allocation2 + $0x198] sm:$0xff]  ;;  %v2417_v1 = vpack.c.bf16 %v66_v56, %v62_v55  ;;  %v2421_v2 = vpack.c.bf16 %v68_v59, %v64_v57  ;;  %v70_v4 = vld [vmem:[#allocation2 + $0x180] sm:$0xff]  ;;  %v144_v56 = vlaneseq }
  0x21   :  { %1701 = vmatprep.subr.bf16.mxu1 %v2402_v45  ;;  %v77_v63 = vld [vmem:[#allocation2 + $0x1b8] sm:$0xff]  ;;  %v2423_v3 = vpack.c.bf16 %v75_v61, %v71_v60  ;;  %v74_v6 = vld [vmem:[#allocation2 + $0x1a0] sm:$0xff]  ;;  %v72_v7 = vld [vmem:[#allocation2 + $0x190] sm:$0xff] }
  0x22   :  { %v2426_v8 = vpack.c.bf16 %v77_v63, %v73_v62  ;;  %v76_v11 = vld [vmem:[#allocation2 + $0x1b0] sm:$0xff]  ;;  %v79_v12 = vld [vmem:[#allocation2 + $0x1c8] sm:$0xff]  ;;  %v81_v15 = vld [vmem:[#allocation2 + $0x1d8] sm:$0xff]  ;;  %v2429_v17 = vpack.c.bf16 %v74_v6, %v70_v4  ;;  %v145_v57 = vshrl.u32 %v144_v56, 7 }
  0x23   :  { %1671 = vmatpush1.bf16.msra.mxu0 %v2405_v52  ;;  %v83_v13 = vld [vmem:[#allocation2 + $0x1e8] sm:$0xff]  ;;  %v85_v16 = vld [vmem:[#allocation2 + $0x1f8] sm:$0xff]  ;;  %v78_v20 = vld [vmem:[#allocation2 + $0x1c0] sm:$0xff]  ;;  %v2433_v21 = vpack.c.bf16 %v76_v11, %v72_v7 }
  0x24   :  { %1703 = vmatpush1.bf16.msra.mxu1 %v2409_v53  ;;  %1673 = vmatprep.subr.bf16.mxu0 %v2411_v54  ;;  %v2435_v22 = vpack.c.bf16 %v83_v13, %v79_v12  ;;  %v82_v24 = vld [vmem:[#allocation2 + $0x1e0] sm:$0xff]  ;;  %v80_v25 = vld [vmem:[#allocation2 + $0x1d0] sm:$0xff]  ;;  %v2441_v29 = vpack.c.bf16 %v85_v16, %v81_v15  ;;  %v87_v31 = vld [vmem:[#allocation2 + $0x208] sm:$0xff]  ;;  %v146_v59 = vsub.s32 0, %v145_v57  ;;  %v150_v61 = vsub.s32 1, %v145_v57 }
  0x25   :  { %1705 = vmatprep.subr.bf16.mxu1 %v2414_v58  ;;  %v95_v26 = vld [vmem:[%s2839_s0] sm:$0xff]  ;;  %v84_v30 = vld [vmem:[#allocation2 + $0x1f0] sm:$0xff]  ;;  %v91_v33 = vld [vmem:[#allocation2 + $0x228] sm:$0xff]  ;;  %v2447_v38 = vpack.c.bf16 %v82_v24, %v78_v20  ;;  %v154_v7 = vsub.s32 2, %v145_v57  ;;  %v158_v24 = vsub.s32 3, %v145_v57 }
  0x26   :  { %105 = vperm.xlu0 %2173, %v95_v26   ;;  %v89_v34 = vld [vmem:[#allocation2 + $0x218] sm:$0xff]  ;;  %v96_v37 = vld [vmem:[%s2839_s0 + $0x8] sm:$0xff]  ;;  %v2451_v39 = vpack.c.bf16 %v84_v30, %v80_v25  ;;  %v2453_v42 = vpack.c.bf16 %v91_v33, %v87_v31  ;;  %v86_v43 = vld [vmem:[#allocation2 + $0x200] sm:$0xff] }
  0x27   :  { %1675 = vmatpush1.bf16.msra.mxu0 %v2417_v1  ;;  %v93_v35 = vld [vmem:[#allocation2 + $0x238] sm:$0xff]  ;;  %v90_v44 = vld [vmem:[#allocation2 + $0x220] sm:$0xff]  ;;  %v88_v47 = vld [vmem:[#allocation2 + $0x210] sm:$0xff] }
  0x28   :  { %1707 = vmatpush1.bf16.msra.mxu1 %v2421_v2  ;;  %1677 = vmatprep.subr.bf16.mxu0 %v2423_v3  ;;  %v2456_v46 = vpack.c.bf16 %v93_v35, %v89_v34  ;;  %v92_v48 = vld [vmem:[#allocation2 + $0x230] sm:$0xff]  ;;  %v99_v49 = vld [vmem:[%s2839_s0 + $0x20] sm:$0xff]  ;;  %v2462_v50 = vpack.c.bf16 %v90_v44, %v86_v43 }
  0x29   :  { %1709 = vmatprep.subr.bf16.mxu1 %v2426_v8  ;;  %v2466_v51 = vpack.c.bf16 %v92_v48, %v88_v47  ;;  %v101_v55 = vld [vmem:[%s2839_s0 + $0x30] sm:$0xff] }
  0x2a   :  { %110 = vperm.xlu0 %2173, %v96_v37   ;;  %v94_v60 = vld [vmem:[#allocation2] ss:$8 sm:$0xf] }
  0x2b   :  { %1679 = vmatpush1.bf16.msra.mxu0 %v2429_v17  ;;  %v2512_v62 = vrot.slane %v94_v60, %v146_v59  ;;  %v29_v63 = vld [vmem:[#allocation2 + $0x20] ss:$8 sm:$0xf]  ;;  %v2514_v4 = vrot.slane %v94_v60, %v150_v61  ;;  %v2522_v16 = vrot.slane %v94_v60, %v154_v7  ;;  %v2529_v37 = vrot.slane %v94_v60, %v158_v24 }
  0x2c   :  { %1711 = vmatpush1.bf16.msra.mxu1 %v2433_v21  ;;  %1681 = vmatprep.subr.bf16.mxu0 %v2435_v22  ;;  %v2517_v12 = vrot.slane %v29_v63, %v146_v59  ;;  %v2520_v15 = vrot.slane %v29_v63, %v150_v61  ;;  %v2527_v31 = vrot.slane %v29_v63, %v154_v7 }
  0x2d   :  { %1713 = vmatprep.subr.bf16.mxu1 %v2441_v29  ;;  %v2533_v56 = vrot.slane %v29_v63, %v158_v24 }
  0x2e   :  { %125 = vperm.xlu0 %2173, %v99_v49  }
  0x2f   :  { %1683 = vmatpush1.bf16.msra.mxu0 %v2447_v38 }
  0x30   :  { %1715 = vmatpush1.bf16.msra.mxu1 %v2451_v39  ;;  %1685 = vmatprep.subr.bf16.mxu0 %v2453_v42 }
  0x31   :  { %1717 = vmatprep.subr.bf16.mxu1 %v2456_v46 }
  0x32   :  { %135 = vperm.xlu0 %2173, %v101_v55  }
  0x33   :  { %1687 = vmatpush1.bf16.msra.mxu0 %v2462_v50 }
  0x34   :  { %1719 = vmatpush1.bf16.msra.mxu1 %v2466_v51  ;;  %1721 = vmatprep.subr.bf16.mxu0 %v2366_v5 }
  0x35   :  { %1753 = vmatprep.subr.bf16.mxu1 %v2368_v9 }
  0x36   :  { %314 = vmatmul.mubr.f32.vlgmr.msra.gmra.mrb[0].mxu0 %v2330_v0 }
  0x37   :  { %385 = vmatmul.mubr.f32.vlgmr.msra.gmra.mrb[0].mxu1 %v2330_v0  ;;  %1723 = vmatpush1.bf16.msra.mxu0 %v2370_v10 }
  0x38   :  { %1755 = vmatpush1.bf16.msra.mxu1 %v2373_v14  ;;  %1725 = vmatprep.subr.bf16.mxu0 %v2377_v18 }
  0x39   :  { %1757 = vmatprep.subr.bf16.mxu1 %v2379_v19  ;;  %483 = vmatprep.mubr.f32.mxu0 %v2330_v0 }
  0x3a   :  { %554 = vmatprep.mubr.f32.mxu1 %v2330_v0 }
  0x3b   :  { %1727 = vmatpush1.bf16.msra.mxu0 %v2382_v23 }
  0x3c   :  { %1759 = vmatpush1.bf16.msra.mxu1 %v2386_v27  ;;  %1729 = vmatprep.subr.bf16.mxu0 %v2388_v28 }
  0x3d   :  { %1761 = vmatprep.subr.bf16.mxu1 %v2390_v32 }
  0x3f   :  { %1731 = vmatpush1.bf16.msra.mxu0 %v2393_v36 }
  0x40   :  { %1763 = vmatpush1.bf16.msra.mxu1 %v2397_v40  ;;  %1733 = vmatprep.subr.bf16.mxu0 %v2399_v41 }
  0x41   :  { %1765 = vmatprep.subr.bf16.mxu1 %v2402_v45 }
  0x43   :  { %1735 = vmatpush1.bf16.msra.mxu0 %v2405_v52 }
  0x44   :  { %1767 = vmatpush1.bf16.msra.mxu1 %v2409_v53  ;;  %1737 = vmatprep.subr.bf16.mxu0 %v2411_v54 }
  0x45   :  { %1769 = vmatprep.subr.bf16.mxu1 %v2414_v58 }
  0x47   :  { %1739 = vmatpush1.bf16.msra.mxu0 %v2417_v1 }
  0x48   :  { %1771 = vmatpush1.bf16.msra.mxu1 %v2421_v2  ;;  %1741 = vmatprep.subr.bf16.mxu0 %v2423_v3 }
  0x49   :  { %1773 = vmatprep.subr.bf16.mxu1 %v2426_v8 }
  0x4b   :  { %1743 = vmatpush1.bf16.msra.mxu0 %v2429_v17 }
  0x4c   :  { %1775 = vmatpush1.bf16.msra.mxu1 %v2433_v21  ;;  %1745 = vmatprep.subr.bf16.mxu0 %v2435_v22 }
  0x4d   :  { %1777 = vmatprep.subr.bf16.mxu1 %v2441_v29 }
  0x4f   :  { %1747 = vmatpush1.bf16.msra.mxu0 %v2447_v38 }
  0x50   :  { %1779 = vmatpush1.bf16.msra.mxu1 %v2451_v39  ;;  %1749 = vmatprep.subr.bf16.mxu0 %v2453_v42 }
  0x51   :  { %1781 = vmatprep.subr.bf16.mxu1 %v2456_v46 }
  0x53   :  { %1751 = vmatpush1.bf16.msra.mxu0 %v2462_v50 }
  0x54   :  { %1783 = vmatpush1.bf16.msra.mxu1 %v2466_v51  ;;  %1785 = vmatprep.subr.bf16.mxu0 %v2366_v5 }
  0x55   :  { %1817 = vmatprep.subr.bf16.mxu1 %v2368_v9 }
  0xa5   :  { %v106_v6 = vpop.permute.xlu0 %105 }
  0xa6   :  { %v164_v11 = vmul.f32 %v2512_v62, %v106_v6  ;;  %v165_v13 = vmul.f32 %v2514_v4, %v106_v6  ;;  %v166_v30 = vmul.f32 %v2522_v16, %v106_v6  ;;  %v167_v55 = vmul.f32 %v2529_v37, %v106_v6 }
  0xa8   :  { %v217_v20 = vadd.f32 %v2517_v12, %v164_v11  ;;  %v218_v25 = vadd.f32 %v2520_v15, %v165_v13  ;;  %v219_v48 = vadd.f32 %v2527_v31, %v166_v30  ;;  %v220_v59 = vadd.f32 %v2533_v56, %v167_v55  ;;  %v102_v55 = vld [vmem:[%s2839_s0 + $0x38] sm:$0xff] }
 0x109   :  { %v315_v26 = vpop.f32.mrb[0].mxu0 }
 0x10a   :  { %v391_v33 = vadd.f32 %v315_v26, %v217_v20  ;;  %v386_v34 = vpop.f32.mrb[0].mxu1  ;;  %v317_v35 = vpop.f32.mrb[1].mxu0 }
 0x10b   :  { %v392_v43 = vadd.f32 %v317_v35, %v218_v25  ;;  %v388_v44 = vpop.f32.mrb[1].mxu1  ;;  %v393_v57 = vadd.f32 %v386_v34, %v219_v48  ;;  %v98_v48 = vld [vmem:[%s2839_s0 + $0x18] sm:$0xff] }
 0x10c   :  { %v1630_v47 = vmul.f32 -1.442695, %v391_v33  ;;  %v394_v7 = vadd.f32 %v388_v44, %v220_v59 }
 0x10d   :  { %v1631_v49 = vmul.f32 -1.442695, %v392_v43  ;;  %v1632_v61 = vmul.f32 -1.442695, %v393_v57  ;;  %v111_v57 = vpop.permute.xlu0 %110 }
 0x10e   :  { %2175 = vpow2.f32 %v1630_v47  ;;  %v97_v47 = vld [vmem:[%s2839_s0 + $0x10] sm:$0xff]  ;;  %v168_v59 = vmul.f32 %v2512_v62, %v111_v57 }
 0x10f   :  { %2177 = vpow2.f32 %v1631_v49  ;;  %115 = vperm.xlu1 %2174, %v97_v47   ;;  %v100_v49 = vld [vmem:[%s2839_s0 + $0x28] sm:$0xff] }
 0x110   :  { %2179 = vpow2.f32 %v1632_v61  ;;  %v169_v61 = vmul.f32 %v2514_v4, %v111_v57 }
 0x111   :  { %2181 = vtanh.f32 %v394_v7  ;;  %v221_v7 = vadd.f32 %v2517_v12, %v168_v59 }
 0x113   :  { %120 = vperm.xlu1 %2174, %v98_v48  }
 0x117   :  { %130 = vperm.xlu1 %2174, %v100_v49  }
 0x118   :  { %v2176_v11 = vpop.eup %2175 }
 0x119   :  { %v404_v60 = vadd.f32 1.0, %v2176_v11  ;;  %v2178_v13 = vpop.eup %2177 }
 0x11a   :  { %v405_v20 = vadd.f32 1.0, %v2178_v13  ;;  %v2180_v25 = vpop.eup %2179  ;;  %v222_v13 = vadd.f32 %v2520_v15, %v169_v61 }
 0x11b   :  { %2183 = vrcp.f32 %v404_v60  ;;  %v2182_v26 = vpop.eup %2181  ;;  %v406_v24 = vadd.f32 1.0, %v2180_v25  ;;  %140 = vperm.xlu1 %2174, %v102_v55  }
 0x11c   :  { %2185 = vrcp.f32 %v405_v20 }
 0x11d   :  { %2187 = vrcp.f32 %v406_v24 }
 0x125   :  { %v2184_v30 = vpop.eup %2183 }
 0x126   :  { %v415_v6 = vmul.f32 %v2184_v30, %v2182_v26  ;;  %v2186_v63 = vpop.eup %2185 }
 0x127   :  { %v414_v33 = vmul.f32 0.0, %v2186_v63  ;;  %v2188_v35 = vpop.eup %2187  ;;  %v170_v63 = vmul.f32 %v2522_v16, %v111_v57 }
 0x129   :  { %v2536_v34 = vadd.f32 %v415_v6, %v414_v33  ;;  %v171_v33 = vmul.f32 %v2529_v37, %v111_v57 }
 0x12b   :  { %2189 = vtanh.f32 %v2536_v34 }
 0x135   :  { %v2190_v43 = vpop.eup %2189 }
 0x136   :  { %v418_v44 = vmul.f32 %v2190_v43, %v2188_v35  ;;  %v223_v35 = vadd.f32 %v2527_v31, %v170_v63 }
 0x138   :  { %484 = vmatmul.mubr.f32.vlgmr.msra.gmra.mrb[2].mxu0 %v418_v44  ;;  %555 = vmatmul.mubr.f32.vlgmr.msra.gmra.mrb[2].mxu1 %v418_v44  ;;  %v224_v44 = vadd.f32 %v2533_v56, %v171_v33 }
 0x139   :  { %1787 = vmatpush1.bf16.msra.mxu0 %v2370_v10  ;;  %1819 = vmatpush1.bf16.msra.mxu1 %v2373_v14 }
 0x13a   :  { %1789 = vmatprep.subr.bf16.mxu0 %v2377_v18  ;;  %1821 = vmatprep.subr.bf16.mxu1 %v2379_v19 }
 0x13b   :  { %653 = vmatprep.mubr.f32.mxu0 %v2330_v0  ;;  %724 = vmatprep.mubr.f32.mxu1 %v2330_v0 }
 0x13d   :  { %1791 = vmatpush1.bf16.msra.mxu0 %v2382_v23  ;;  %1823 = vmatpush1.bf16.msra.mxu1 %v2386_v27 }
 0x13e   :  { %1793 = vmatprep.subr.bf16.mxu0 %v2388_v28  ;;  %1825 = vmatprep.subr.bf16.mxu1 %v2390_v32 }
 0x141   :  { %1795 = vmatpush1.bf16.msra.mxu0 %v2393_v36  ;;  %1827 = vmatpush1.bf16.msra.mxu1 %v2397_v40 }
 0x142   :  { %1797 = vmatprep.subr.bf16.mxu0 %v2399_v41  ;;  %1829 = vmatprep.subr.bf16.mxu1 %v2402_v45 }
 0x145   :  { %1799 = vmatpush1.bf16.msra.mxu0 %v2405_v52  ;;  %1831 = vmatpush1.bf16.msra.mxu1 %v2409_v53 }
 0x146   :  { %1801 = vmatprep.subr.bf16.mxu0 %v2411_v54  ;;  %1833 = vmatprep.subr.bf16.mxu1 %v2414_v58 }
 0x149   :  { %1803 = vmatpush1.bf16.msra.mxu0 %v2417_v1  ;;  %1835 = vmatpush1.bf16.msra.mxu1 %v2421_v2 }
 0x14a   :  { %1805 = vmatprep.subr.bf16.mxu0 %v2423_v3  ;;  %1837 = vmatprep.subr.bf16.mxu1 %v2426_v8 }
 0x14d   :  { %1807 = vmatpush1.bf16.msra.mxu0 %v2429_v17  ;;  %1839 = vmatpush1.bf16.msra.mxu1 %v2433_v21 }
 0x14e   :  { %1809 = vmatprep.subr.bf16.mxu0 %v2435_v22  ;;  %1841 = vmatprep.subr.bf16.mxu1 %v2441_v29 }
 0x151   :  { %1811 = vmatpush1.bf16.msra.mxu0 %v2447_v38  ;;  %1843 = vmatpush1.bf16.msra.mxu1 %v2451_v39 }
 0x152   :  { %1813 = vmatprep.subr.bf16.mxu0 %v2453_v42  ;;  %1845 = vmatprep.subr.bf16.mxu1 %v2456_v46 }
 0x155   :  { %1815 = vmatpush1.bf16.msra.mxu0 %v2462_v50  ;;  %1847 = vmatpush1.bf16.msra.mxu1 %v2466_v51 }
 0x156   :  { %1849 = vmatprep.subr.bf16.mxu0 %v2366_v5  ;;  %1881 = vmatprep.subr.bf16.mxu1 %v2368_v9 }
 0x20b   :  { %v485_v11 = vpop.f32.mrb[2].mxu0  ;;  %v556_v60 = vpop.f32.mrb[2].mxu1 }
 0x20c   :  { %v561_v20 = vadd.f32 %v485_v11, %v221_v7  ;;  %v487_v25 = vpop.f32.mrb[3].mxu0  ;;  %v558_v26 = vpop.f32.mrb[3].mxu1  ;;  %v563_v43 = vadd.f32 %v556_v60, %v223_v35 }
 0x20d   :  { %v562_v30 = vadd.f32 %v487_v25, %v222_v13  ;;  %v564_v47 = vadd.f32 %v558_v26, %v224_v44 }
 0x20e   :  { %v1633_v6 = vmul.f32 -1.442695, %v561_v20  ;;  %v1635_v48 = vmul.f32 -1.442695, %v563_v43 }
 0x20f   :  { %v1634_v24 = vmul.f32 -1.442695, %v562_v30 }
 0x210   :  { %2191 = vpow2.f32 %v1633_v6 }
 0x211   :  { %2193 = vpow2.f32 %v1634_v24 }
 0x212   :  { %2195 = vtanh.f32 %v564_v47 }
 0x213   :  { %2197 = vpow2.f32 %v1635_v48 }
 0x21a   :  { %v2192_v49 = vpop.eup %2191 }
 0x21b   :  { %v574_v55 = vadd.f32 1.0, %v2192_v49  ;;  %v2194_v59 = vpop.eup %2193 }
 0x21c   :  { %v575_v61 = vadd.f32 1.0, %v2194_v59  ;;  %v2196_v7 = vpop.eup %2195 }
 0x21d   :  { %2199 = vrcp.f32 %v574_v55  ;;  %v2198_v11 = vpop.eup %2197 }
 0x21e   :  { %2201 = vrcp.f32 %v575_v61  ;;  %v576_v25 = vadd.f32 1.0, %v2198_v11 }
 0x220   :  { %2203 = vrcp.f32 %v576_v25 }
 0x227   :  { %v2200_v13 = vpop.eup %2199 }
 0x228   :  { %v585_v57 = vmul.f32 %v2200_v13, %v2196_v7  ;;  %v2202_v20 = vpop.eup %2201 }
 0x229   :  { %v584_v60 = vmul.f32 %v2202_v20, %v2536_v34  ;;  %v116_v34 = vpop.permute.xlu1 %115 }
 0x22a   :  { %v2204_v26 = vpop.eup %2203  ;;  %v172_v24 = vmul.f32 %v2512_v62, %v116_v34  ;;  %v173_v33 = vmul.f32 %v2514_v4, %v116_v34  ;;  %v174_v49 = vmul.f32 %v2522_v16, %v116_v34  ;;  %v175_v13 = vmul.f32 %v2529_v37, %v116_v34 }
 0x22b   :  { %v2594_v30 = vadd.f32 %v585_v57, %v584_v60 }
 0x22c   :  { %v225_v35 = vadd.f32 %v2517_v12, %v172_v24  ;;  %v226_v43 = vadd.f32 %v2520_v15, %v173_v33  ;;  %v227_v57 = vadd.f32 %v2527_v31, %v174_v49  ;;  %v228_v20 = vadd.f32 %v2533_v56, %v175_v13 }
 0x22d   :  { %2205 = vtanh.f32 %v2594_v30 }
 0x237   :  { %v2206_v6 = vpop.eup %2205 }
 0x238   :  { %v588_v63 = vmul.f32 %v2206_v6, %v2204_v26 }
 0x23a   :  { %654 = vmatmul.mubr.f32.vlgmr.msra.gmra.mrb[4].mxu0 %v588_v63  ;;  %725 = vmatmul.mubr.f32.vlgmr.msra.gmra.mrb[4].mxu1 %v588_v63 }
 0x23b   :  { %1851 = vmatpush1.bf16.msra.mxu0 %v2370_v10  ;;  %1883 = vmatpush1.bf16.msra.mxu1 %v2373_v14 }
 0x23c   :  { %1853 = vmatprep.subr.bf16.mxu0 %v2377_v18  ;;  %1885 = vmatprep.subr.bf16.mxu1 %v2379_v19 }
 0x23d   :  { %823 = vmatprep.mubr.f32.mxu0 %v2330_v0  ;;  %894 = vmatprep.mubr.f32.mxu1 %v2330_v0 }
 0x23f   :  { %1855 = vmatpush1.bf16.msra.mxu0 %v2382_v23  ;;  %1887 = vmatpush1.bf16.msra.mxu1 %v2386_v27 }
 0x240   :  { %1857 = vmatprep.subr.bf16.mxu0 %v2388_v28  ;;  %1889 = vmatprep.subr.bf16.mxu1 %v2390_v32 }
 0x243   :  { %1859 = vmatpush1.bf16.msra.mxu0 %v2393_v36  ;;  %1891 = vmatpush1.bf16.msra.mxu1 %v2397_v40 }
 0x244   :  { %1861 = vmatprep.subr.bf16.mxu0 %v2399_v41  ;;  %1893 = vmatprep.subr.bf16.mxu1 %v2402_v45 }
 0x247   :  { %1863 = vmatpush1.bf16.msra.mxu0 %v2405_v52  ;;  %1895 = vmatpush1.bf16.msra.mxu1 %v2409_v53 }
 0x248   :  { %1865 = vmatprep.subr.bf16.mxu0 %v2411_v54  ;;  %1897 = vmatprep.subr.bf16.mxu1 %v2414_v58 }
 0x24b   :  { %1867 = vmatpush1.bf16.msra.mxu0 %v2417_v1  ;;  %1899 = vmatpush1.bf16.msra.mxu1 %v2421_v2 }
 0x24c   :  { %1869 = vmatprep.subr.bf16.mxu0 %v2423_v3  ;;  %1901 = vmatprep.subr.bf16.mxu1 %v2426_v8 }
 0x24f   :  { %1871 = vmatpush1.bf16.msra.mxu0 %v2429_v17  ;;  %1903 = vmatpush1.bf16.msra.mxu1 %v2433_v21 }
 0x250   :  { %1873 = vmatprep.subr.bf16.mxu0 %v2435_v22  ;;  %1905 = vmatprep.subr.bf16.mxu1 %v2441_v29 }
 0x253   :  { %1875 = vmatpush1.bf16.msra.mxu0 %v2447_v38  ;;  %1907 = vmatpush1.bf16.msra.mxu1 %v2451_v39 }
 0x254   :  { %1877 = vmatprep.subr.bf16.mxu0 %v2453_v42  ;;  %1909 = vmatprep.subr.bf16.mxu1 %v2456_v46 }
 0x257   :  { %1879 = vmatpush1.bf16.msra.mxu0 %v2462_v50  ;;  %1911 = vmatpush1.bf16.msra.mxu1 %v2466_v51 }
 0x258   :  { %1913 = vmatprep.subr.bf16.mxu0 %v2366_v5  ;;  %1945 = vmatprep.subr.bf16.mxu1 %v2368_v9 }
 0x30d   :  { %v655_v44 = vpop.f32.mrb[4].mxu0  ;;  %v726_v47 = vpop.f32.mrb[4].mxu1 }
 0x30e   :  { %v731_v48 = vadd.f32 %v655_v44, %v225_v35  ;;  %v657_v55 = vpop.f32.mrb[5].mxu0  ;;  %v728_v59 = vpop.f32.mrb[5].mxu1  ;;  %v733_v25 = vadd.f32 %v726_v47, %v227_v57 }
 0x30f   :  { %v732_v61 = vadd.f32 %v657_v55, %v226_v43  ;;  %v734_v60 = vadd.f32 %v728_v59, %v228_v20 }
 0x310   :  { %v1636_v7 = vmul.f32 -1.442695, %v731_v48  ;;  %v1638_v26 = vmul.f32 -1.442695, %v733_v25 }
 0x311   :  { %v1637_v11 = vmul.f32 -1.442695, %v732_v61 }
 0x312   :  { %2207 = vpow2.f32 %v1636_v7 }
 0x313   :  { %2209 = vpow2.f32 %v1637_v11 }
 0x314   :  { %2211 = vtanh.f32 %v734_v60 }
 0x315   :  { %2213 = vpow2.f32 %v1638_v26 }
 0x31c   :  { %v2208_v6 = vpop.eup %2207 }
 0x31d   :  { %v744_v63 = vadd.f32 1.0, %v2208_v6  ;;  %v2210_v24 = vpop.eup %2209 }
 0x31e   :  { %v745_v33 = vadd.f32 1.0, %v2210_v24  ;;  %v2212_v35 = vpop.eup %2211 }
 0x31f   :  { %2215 = vrcp.f32 %v744_v63  ;;  %v2214_v43 = vpop.eup %2213 }
 0x320   :  { %2217 = vrcp.f32 %v745_v33  ;;  %v746_v49 = vadd.f32 1.0, %v2214_v43 }
 0x322   :  { %2219 = vrcp.f32 %v746_v49 }
 0x329   :  { %v2216_v34 = vpop.eup %2215 }
 0x32a   :  { %v755_v44 = vmul.f32 %v2216_v34, %v2212_v35  ;;  %v2218_v48 = vpop.eup %2217 }
 0x32b   :  { %v754_v55 = vmul.f32 %v2218_v48, %v2594_v30  ;;  %v121_v30 = vpop.permute.xlu1 %120 }
 0x32c   :  { %v2220_v47 = vpop.eup %2219  ;;  %v176_v11 = vmul.f32 %v2512_v62, %v121_v30  ;;  %v177_v13 = vmul.f32 %v2514_v4, %v121_v30  ;;  %v178_v35 = vmul.f32 %v2522_v16, %v121_v30  ;;  %v179_v34 = vmul.f32 %v2529_v37, %v121_v30 }
 0x32d   :  { %v2640_v61 = vadd.f32 %v755_v44, %v754_v55 }
 0x32e   :  { %v229_v57 = vadd.f32 %v2517_v12, %v176_v11  ;;  %v230_v60 = vadd.f32 %v2520_v15, %v177_v13  ;;  %v231_v44 = vadd.f32 %v2527_v31, %v178_v35  ;;  %v232_v49 = vadd.f32 %v2533_v56, %v179_v34 }
 0x32f   :  { %2221 = vtanh.f32 %v2640_v61 }
 0x339   :  { %v2222_v59 = vpop.eup %2221 }
 0x33a   :  { %v758_v7 = vmul.f32 %v2222_v59, %v2220_v47 }
 0x33c   :  { %824 = vmatmul.mubr.f32.vlgmr.msra.gmra.mrb[6].mxu0 %v758_v7  ;;  %895 = vmatmul.mubr.f32.vlgmr.msra.gmra.mrb[6].mxu1 %v758_v7 }
 0x33d   :  { %1915 = vmatpush1.bf16.msra.mxu0 %v2370_v10  ;;  %1947 = vmatpush1.bf16.msra.mxu1 %v2373_v14 }
 0x33e   :  { %1917 = vmatprep.subr.bf16.mxu0 %v2377_v18  ;;  %1949 = vmatprep.subr.bf16.mxu1 %v2379_v19 }
 0x33f   :  { %993 = vmatprep.mubr.f32.mxu0 %v2330_v0  ;;  %1064 = vmatprep.mubr.f32.mxu1 %v2330_v0 }
 0x341   :  { %1919 = vmatpush1.bf16.msra.mxu0 %v2382_v23  ;;  %1951 = vmatpush1.bf16.msra.mxu1 %v2386_v27 }
 0x342   :  { %1921 = vmatprep.subr.bf16.mxu0 %v2388_v28  ;;  %1953 = vmatprep.subr.bf16.mxu1 %v2390_v32 }
 0x345   :  { %1923 = vmatpush1.bf16.msra.mxu0 %v2393_v36  ;;  %1955 = vmatpush1.bf16.msra.mxu1 %v2397_v40 }
 0x346   :  { %1925 = vmatprep.subr.bf16.mxu0 %v2399_v41  ;;  %1957 = vmatprep.subr.bf16.mxu1 %v2402_v45 }
 0x349   :  { %1927 = vmatpush1.bf16.msra.mxu0 %v2405_v52  ;;  %1959 = vmatpush1.bf16.msra.mxu1 %v2409_v53 }
 0x34a   :  { %1929 = vmatprep.subr.bf16.mxu0 %v2411_v54  ;;  %1961 = vmatprep.subr.bf16.mxu1 %v2414_v58 }
 0x34d   :  { %1931 = vmatpush1.bf16.msra.mxu0 %v2417_v1  ;;  %1963 = vmatpush1.bf16.msra.mxu1 %v2421_v2 }
 0x34e   :  { %1933 = vmatprep.subr.bf16.mxu0 %v2423_v3  ;;  %1965 = vmatprep.subr.bf16.mxu1 %v2426_v8 }
 0x351   :  { %1935 = vmatpush1.bf16.msra.mxu0 %v2429_v17  ;;  %1967 = vmatpush1.bf16.msra.mxu1 %v2433_v21 }
 0x352   :  { %1937 = vmatprep.subr.bf16.mxu0 %v2435_v22  ;;  %1969 = vmatprep.subr.bf16.mxu1 %v2441_v29 }
 0x355   :  { %1939 = vmatpush1.bf16.msra.mxu0 %v2447_v38  ;;  %1971 = vmatpush1.bf16.msra.mxu1 %v2451_v39 }
 0x356   :  { %1941 = vmatprep.subr.bf16.mxu0 %v2453_v42  ;;  %1973 = vmatprep.subr.bf16.mxu1 %v2456_v46 }
 0x359   :  { %1943 = vmatpush1.bf16.msra.mxu0 %v2462_v50  ;;  %1975 = vmatpush1.bf16.msra.mxu1 %v2466_v51 }
 0x35a   :  { %1977 = vmatprep.subr.bf16.mxu0 %v2366_v5  ;;  %2009 = vmatprep.subr.bf16.mxu1 %v2368_v9 }
 0x40f   :  { %v825_v20 = vpop.f32.mrb[6].mxu0  ;;  %v896_v25 = vpop.f32.mrb[6].mxu1 }
 0x410   :  { %v901_v26 = vadd.f32 %v825_v20, %v229_v57  ;;  %v827_v6 = vpop.f32.mrb[7].mxu0  ;;  %v898_v63 = vpop.f32.mrb[7].mxu1  ;;  %v903_v48 = vadd.f32 %v896_v25, %v231_v44 }
 0x411   :  { %v902_v24 = vadd.f32 %v827_v6, %v230_v60  ;;  %v904_v55 = vadd.f32 %v898_v63, %v232_v49 }
 0x412   :  { %v1639_v33 = vmul.f32 -1.442695, %v901_v26  ;;  %v1641_v47 = vmul.f32 -1.442695, %v903_v48 }
 0x413   :  { %v1640_v43 = vmul.f32 -1.442695, %v902_v24 }
 0x414   :  { %2223 = vpow2.f32 %v1639_v33 }
 0x415   :  { %2225 = vpow2.f32 %v1640_v43 }
 0x416   :  { %2227 = vtanh.f32 %v904_v55 }
 0x417   :  { %2229 = vpow2.f32 %v1641_v47 }
 0x41e   :  { %v2224_v59 = vpop.eup %2223 }
 0x41f   :  { %v914_v7 = vadd.f32 1.0, %v2224_v59  ;;  %v2226_v11 = vpop.eup %2225 }
 0x420   :  { %v915_v13 = vadd.f32 1.0, %v2226_v11  ;;  %v2228_v57 = vpop.eup %2227 }
 0x421   :  { %2231 = vrcp.f32 %v914_v7  ;;  %v2230_v20 = vpop.eup %2229 }
 0x422   :  { %2233 = vrcp.f32 %v915_v13  ;;  %v916_v6 = vadd.f32 1.0, %v2230_v20 }
 0x424   :  { %2235 = vrcp.f32 %v916_v6 }
 0x42b   :  { %v2232_v60 = vpop.eup %2231 }
 0x42c   :  { %v925_v30 = vmul.f32 %v2232_v60, %v2228_v57  ;;  %v2234_v26 = vpop.eup %2233 }
 0x42d   :  { %v924_v25 = vmul.f32 %v2234_v26, %v2640_v61  ;;  %v126_v61 = vpop.permute.xlu0 %125 }
 0x42e   :  { %v2236_v63 = vpop.eup %2235  ;;  %v180_v43 = vmul.f32 %v2512_v62, %v126_v61  ;;  %v181_v34 = vmul.f32 %v2514_v4, %v126_v61  ;;  %v182_v57 = vmul.f32 %v2522_v16, %v126_v61  ;;  %v183_v60 = vmul.f32 %v2529_v37, %v126_v61 }
 0x42f   :  { %v2686_v24 = vadd.f32 %v925_v30, %v924_v25 }
 0x430   :  { %v233_v44 = vadd.f32 %v2517_v12, %v180_v43  ;;  %v234_v55 = vadd.f32 %v2520_v15, %v181_v34  ;;  %v235_v30 = vadd.f32 %v2527_v31, %v182_v57  ;;  %v236_v6 = vadd.f32 %v2533_v56, %v183_v60 }
 0x431   :  { %2237 = vtanh.f32 %v2686_v24 }
 0x43b   :  { %v2238_v33 = vpop.eup %2237 }
 0x43c   :  { %v928_v35 = vmul.f32 %v2238_v33, %v2236_v63 }
 0x43e   :  { %994 = vmatmul.mubr.f32.vlgmr.msra.gmra.mrb[8].mxu0 %v928_v35  ;;  %1065 = vmatmul.mubr.f32.vlgmr.msra.gmra.mrb[8].mxu1 %v928_v35 }
 0x43f   :  { %1979 = vmatpush1.bf16.msra.mxu0 %v2370_v10  ;;  %2011 = vmatpush1.bf16.msra.mxu1 %v2373_v14 }
 0x440   :  { %1981 = vmatprep.subr.bf16.mxu0 %v2377_v18  ;;  %2013 = vmatprep.subr.bf16.mxu1 %v2379_v19 }
 0x441   :  { %1163 = vmatprep.mubr.f32.mxu0 %v2330_v0  ;;  %1234 = vmatprep.mubr.f32.mxu1 %v2330_v0 }
 0x443   :  { %1983 = vmatpush1.bf16.msra.mxu0 %v2382_v23  ;;  %2015 = vmatpush1.bf16.msra.mxu1 %v2386_v27 }
 0x444   :  { %1985 = vmatprep.subr.bf16.mxu0 %v2388_v28  ;;  %2017 = vmatprep.subr.bf16.mxu1 %v2390_v32 }
 0x447   :  { %1987 = vmatpush1.bf16.msra.mxu0 %v2393_v36  ;;  %2019 = vmatpush1.bf16.msra.mxu1 %v2397_v40 }
 0x448   :  { %1989 = vmatprep.subr.bf16.mxu0 %v2399_v41  ;;  %2021 = vmatprep.subr.bf16.mxu1 %v2402_v45 }
 0x44b   :  { %1991 = vmatpush1.bf16.msra.mxu0 %v2405_v52  ;;  %2023 = vmatpush1.bf16.msra.mxu1 %v2409_v53 }
 0x44c   :  { %1993 = vmatprep.subr.bf16.mxu0 %v2411_v54  ;;  %2025 = vmatprep.subr.bf16.mxu1 %v2414_v58 }
 0x44f   :  { %1995 = vmatpush1.bf16.msra.mxu0 %v2417_v1  ;;  %2027 = vmatpush1.bf16.msra.mxu1 %v2421_v2 }
 0x450   :  { %1997 = vmatprep.subr.bf16.mxu0 %v2423_v3  ;;  %2029 = vmatprep.subr.bf16.mxu1 %v2426_v8 }
 0x453   :  { %1999 = vmatpush1.bf16.msra.mxu0 %v2429_v17  ;;  %2031 = vmatpush1.bf16.msra.mxu1 %v2433_v21 }
 0x454   :  { %2001 = vmatprep.subr.bf16.mxu0 %v2435_v22  ;;  %2033 = vmatprep.subr.bf16.mxu1 %v2441_v29 }
 0x457   :  { %2003 = vmatpush1.bf16.msra.mxu0 %v2447_v38  ;;  %2035 = vmatpush1.bf16.msra.mxu1 %v2451_v39 }
 0x458   :  { %2005 = vmatprep.subr.bf16.mxu0 %v2453_v42  ;;  %2037 = vmatprep.subr.bf16.mxu1 %v2456_v46 }
 0x45b   :  { %2007 = vmatpush1.bf16.msra.mxu0 %v2462_v50  ;;  %2039 = vmatpush1.bf16.msra.mxu1 %v2466_v51 }
 0x45c   :  { %2041 = vmatprep.subr.bf16.mxu0 %v2366_v5  ;;  %2073 = vmatprep.subr.bf16.mxu1 %v2368_v9 }
 0x511   :  { %v995_v48 = vpop.f32.mrb[8].mxu0  ;;  %v1066_v49 = vpop.f32.mrb[8].mxu1 }
 0x512   :  { %v1071_v47 = vadd.f32 %v995_v48, %v233_v44  ;;  %v997_v59 = vpop.f32.mrb[9].mxu0  ;;  %v1068_v7 = vpop.f32.mrb[9].mxu1  ;;  %v1073_v26 = vadd.f32 %v1066_v49, %v235_v30 }
 0x513   :  { %v1072_v11 = vadd.f32 %v997_v59, %v234_v55  ;;  %v1074_v25 = vadd.f32 %v1068_v7, %v236_v6 }
 0x514   :  { %v1642_v13 = vmul.f32 -1.442695, %v1071_v47  ;;  %v1644_v63 = vmul.f32 -1.442695, %v1073_v26 }
 0x515   :  { %v1643_v20 = vmul.f32 -1.442695, %v1072_v11 }
 0x516   :  { %2239 = vpow2.f32 %v1642_v13 }
 0x517   :  { %2241 = vpow2.f32 %v1643_v20 }
 0x518   :  { %2243 = vtanh.f32 %v1074_v25 }
 0x519   :  { %2245 = vpow2.f32 %v1644_v63 }
 0x520   :  { %v2240_v33 = vpop.eup %2239 }
 0x521   :  { %v1084_v35 = vadd.f32 1.0, %v2240_v33  ;;  %v2242_v43 = vpop.eup %2241 }
 0x522   :  { %v1085_v34 = vadd.f32 1.0, %v2242_v43  ;;  %v2244_v44 = vpop.eup %2243 }
 0x523   :  { %2247 = vrcp.f32 %v1084_v35  ;;  %v2246_v48 = vpop.eup %2245 }
 0x524   :  { %2249 = vrcp.f32 %v1085_v34  ;;  %v1086_v59 = vadd.f32 1.0, %v2246_v48 }
 0x526   :  { %2251 = vrcp.f32 %v1086_v59 }
 0x52d   :  { %v2248_v55 = vpop.eup %2247 }
 0x52e   :  { %v1095_v61 = vmul.f32 %v2248_v55, %v2244_v44  ;;  %v2250_v47 = vpop.eup %2249 }
 0x52f   :  { %v1094_v49 = vmul.f32 %v2250_v47, %v2686_v24  ;;  %v131_v24 = vpop.permute.xlu1 %130 }
 0x530   :  { %v2252_v7 = vpop.eup %2251  ;;  %v184_v20 = vmul.f32 %v2512_v62, %v131_v24  ;;  %v185_v60 = vmul.f32 %v2514_v4, %v131_v24 }
 0x531   :  { %v2732_v11 = vadd.f32 %v1095_v61, %v1094_v49 }
 0x532   :  { %v237_v30 = vadd.f32 %v2517_v12, %v184_v20  ;;  %v238_v25 = vadd.f32 %v2520_v15, %v185_v60 }
 0x533   :  { %2253 = vtanh.f32 %v2732_v11 }
 0x53d   :  { %v2254_v13 = vpop.eup %2253 }
 0x53e   :  { %v1098_v57 = vmul.f32 %v2254_v13, %v2252_v7 }
 0x540   :  { %1164 = vmatmul.mubr.f32.vlgmr.msra.gmra.mrb[10].mxu0 %v1098_v57  ;;  %1235 = vmatmul.mubr.f32.vlgmr.msra.gmra.mrb[10].mxu1 %v1098_v57 }
 0x541   :  { %2043 = vmatpush1.bf16.msra.mxu0 %v2370_v10  ;;  %2075 = vmatpush1.bf16.msra.mxu1 %v2373_v14 }
 0x542   :  { %2045 = vmatprep.subr.bf16.mxu0 %v2377_v18  ;;  %2077 = vmatprep.subr.bf16.mxu1 %v2379_v19 }
 0x543   :  { %1333 = vmatprep.mubr.f32.mxu0 %v2330_v0  ;;  %1404 = vmatprep.mubr.f32.mxu1 %v2330_v0 }
 0x545   :  { %2047 = vmatpush1.bf16.msra.mxu0 %v2382_v23  ;;  %2079 = vmatpush1.bf16.msra.mxu1 %v2386_v27 }
 0x546   :  { %2049 = vmatprep.subr.bf16.mxu0 %v2388_v28  ;;  %2081 = vmatprep.subr.bf16.mxu1 %v2390_v32 }
 0x549   :  { %2051 = vmatpush1.bf16.msra.mxu0 %v2393_v36  ;;  %2083 = vmatpush1.bf16.msra.mxu1 %v2397_v40 }
 0x54a   :  { %2053 = vmatprep.subr.bf16.mxu0 %v2399_v41  ;;  %2085 = vmatprep.subr.bf16.mxu1 %v2402_v45 }
 0x54d   :  { %2055 = vmatpush1.bf16.msra.mxu0 %v2405_v52  ;;  %2087 = vmatpush1.bf16.msra.mxu1 %v2409_v53 }
 0x54e   :  { %2057 = vmatprep.subr.bf16.mxu0 %v2411_v54  ;;  %2089 = vmatprep.subr.bf16.mxu1 %v2414_v58 }
 0x551   :  { %2059 = vmatpush1.bf16.msra.mxu0 %v2417_v1  ;;  %2091 = vmatpush1.bf16.msra.mxu1 %v2421_v2 }
 0x552   :  { %2061 = vmatprep.subr.bf16.mxu0 %v2423_v3  ;;  %2093 = vmatprep.subr.bf16.mxu1 %v2426_v8 }
 0x555   :  { %2063 = vmatpush1.bf16.msra.mxu0 %v2429_v17  ;;  %2095 = vmatpush1.bf16.msra.mxu1 %v2433_v21 }
 0x556   :  { %2065 = vmatprep.subr.bf16.mxu0 %v2435_v22  ;;  %2097 = vmatprep.subr.bf16.mxu1 %v2441_v29 }
 0x559   :  { %2067 = vmatpush1.bf16.msra.mxu0 %v2447_v38  ;;  %2099 = vmatpush1.bf16.msra.mxu1 %v2451_v39 }
 0x55a   :  { %2069 = vmatprep.subr.bf16.mxu0 %v2453_v42  ;;  %2101 = vmatprep.subr.bf16.mxu1 %v2456_v46 }
 0x55d   :  { %2071 = vmatpush1.bf16.msra.mxu0 %v2462_v50  ;;  %2103 = vmatpush1.bf16.msra.mxu1 %v2466_v51 }
 0x55e   :  { %2105 = vmatprep.subr.bf16.mxu0 %v2366_v5  ;;  %2137 = vmatprep.subr.bf16.mxu1 %v2368_v9  ;;  %v186_v5 = vmul.f32 %v2522_v16, %v131_v24  ;;  %v187_v9 = vmul.f32 %v2529_v37, %v131_v24 }
 0x560   :  { %v239_v48 = vadd.f32 %v2527_v31, %v186_v5  ;;  %v240_v61 = vadd.f32 %v2533_v56, %v187_v9  ;;  %v141_v9 = vpop.permute.xlu1 %140 }
 0x613   :  { %v1165_v26 = vpop.f32.mrb[10].mxu0  ;;  %v1236_v6 = vpop.f32.mrb[10].mxu1 }
 0x614   :  { %v1241_v63 = vadd.f32 %v1165_v26, %v237_v30  ;;  %v1167_v33 = vpop.f32.mrb[11].mxu0  ;;  %v1238_v35 = vpop.f32.mrb[11].mxu1  ;;  %v1243_v55 = vadd.f32 %v1236_v6, %v239_v48  ;;  %v192_v48 = vmul.f32 %v2512_v62, %v141_v9 }
 0x615   :  { %v1242_v43 = vadd.f32 %v1167_v33, %v238_v25  ;;  %v1244_v47 = vadd.f32 %v1238_v35, %v240_v61 }
 0x616   :  { %v1645_v34 = vmul.f32 -1.442695, %v1241_v63  ;;  %v1647_v59 = vmul.f32 -1.442695, %v1243_v55  ;;  %v193_v55 = vmul.f32 %v2514_v4, %v141_v9  ;;  %v245_v61 = vadd.f32 %v2517_v12, %v192_v48 }
 0x617   :  { %v1646_v44 = vmul.f32 -1.442695, %v1242_v43 }
 0x618   :  { %2255 = vpow2.f32 %v1645_v34 }
 0x619   :  { %2257 = vpow2.f32 %v1646_v44 }
 0x61a   :  { %2259 = vtanh.f32 %v1244_v47 }
 0x61b   :  { %2261 = vpow2.f32 %v1647_v59 }
 0x622   :  { %v2256_v49 = vpop.eup %2255 }
 0x623   :  { %v1254_v7 = vadd.f32 1.0, %v2256_v49  ;;  %v2258_v13 = vpop.eup %2257  ;;  %v246_v49 = vadd.f32 %v2520_v15, %v193_v55 }
 0x624   :  { %v1255_v57 = vadd.f32 1.0, %v2258_v13  ;;  %v2260_v20 = vpop.eup %2259 }
 0x625   :  { %2263 = vrcp.f32 %v1254_v7  ;;  %v2262_v60 = vpop.eup %2261 }
 0x626   :  { %2265 = vrcp.f32 %v1255_v57  ;;  %v1256_v25 = vadd.f32 1.0, %v2262_v60  ;;  %v194_v60 = vmul.f32 %v2522_v16, %v141_v9 }
 0x628   :  { %2267 = vrcp.f32 %v1256_v25 }
 0x62f   :  { %v2264_v30 = vpop.eup %2263 }
 0x630   :  { %v1265_v24 = vmul.f32 %v2264_v30, %v2260_v20  ;;  %v2266_v26 = vpop.eup %2265 }
 0x631   :  { %v1264_v6 = vmul.f32 %v2266_v26, %v2732_v11  ;;  %v195_v26 = vmul.f32 %v2529_v37, %v141_v9 }
 0x632   :  { %v2268_v33 = vpop.eup %2267 }
 0x633   :  { %v2778_v63 = vadd.f32 %v1265_v24, %v1264_v6 }
 0x635   :  { %2269 = vtanh.f32 %v2778_v63 }
 0x63f   :  { %v2270_v35 = vpop.eup %2269 }
 0x640   :  { %v1268_v43 = vmul.f32 %v2270_v35, %v2268_v33 }
 0x642   :  { %1334 = vmatmul.mubr.f32.vlgmr.msra.gmra.mrb[12].mxu0 %v1268_v43  ;;  %1405 = vmatmul.mubr.f32.vlgmr.msra.gmra.mrb[12].mxu1 %v1268_v43 }
 0x643   :  { %2107 = vmatpush1.bf16.msra.mxu0 %v2370_v10  ;;  %2139 = vmatpush1.bf16.msra.mxu1 %v2373_v14 }
 0x644   :  { %2109 = vmatprep.subr.bf16.mxu0 %v2377_v18  ;;  %2141 = vmatprep.subr.bf16.mxu1 %v2379_v19 }
 0x645   :  { %1503 = vmatprep.mubr.f32.mxu0 %v2330_v0  ;;  %1574 = vmatprep.mubr.f32.mxu1 %v2330_v0  ;;  %v136_v0 = vpop.permute.xlu0 %135 }
 0x646   :  { %v188_v10 = vmul.f32 %v2512_v62, %v136_v0  ;;  %v189_v14 = vmul.f32 %v2514_v4, %v136_v0  ;;  %v247_v62 = vadd.f32 %v2527_v31, %v194_v60 }
 0x647   :  { %2111 = vmatpush1.bf16.msra.mxu0 %v2382_v23  ;;  %2143 = vmatpush1.bf16.msra.mxu1 %v2386_v27 }
 0x648   :  { %2113 = vmatprep.subr.bf16.mxu0 %v2388_v28  ;;  %2145 = vmatprep.subr.bf16.mxu1 %v2390_v32  ;;  %v241_v18 = vadd.f32 %v2517_v12, %v188_v10  ;;  %v242_v27 = vadd.f32 %v2520_v15, %v189_v14  ;;  %v248_v12 = vadd.f32 %v2533_v56, %v195_v26 }
 0x64b   :  { %2115 = vmatpush1.bf16.msra.mxu0 %v2393_v36  ;;  %2147 = vmatpush1.bf16.msra.mxu1 %v2397_v40 }
 0x64c   :  { %2117 = vmatprep.subr.bf16.mxu0 %v2399_v41  ;;  %2149 = vmatprep.subr.bf16.mxu1 %v2402_v45  ;;  %v190_v45 = vmul.f32 %v2522_v16, %v136_v0 }
 0x64f   :  { %2119 = vmatpush1.bf16.msra.mxu0 %v2405_v52  ;;  %2151 = vmatpush1.bf16.msra.mxu1 %v2409_v53  ;;  %v191_v53 = vmul.f32 %v2529_v37, %v136_v0 }
 0x650   :  { %2121 = vmatprep.subr.bf16.mxu0 %v2411_v54  ;;  %2153 = vmatprep.subr.bf16.mxu1 %v2414_v58  ;;  %v243_v54 = vadd.f32 %v2527_v31, %v190_v45 }
 0x653   :  { %2123 = vmatpush1.bf16.msra.mxu0 %v2417_v1  ;;  %2155 = vmatpush1.bf16.msra.mxu1 %v2421_v2  ;;  %v244_v1 = vadd.f32 %v2533_v56, %v191_v53 }
 0x654   :  { %2125 = vmatprep.subr.bf16.mxu0 %v2423_v3  ;;  %2157 = vmatprep.subr.bf16.mxu1 %v2426_v8 }
 0x657   :  { %2127 = vmatpush1.bf16.msra.mxu0 %v2429_v17  ;;  %2159 = vmatpush1.bf16.msra.mxu1 %v2433_v21 }
 0x658   :  { %2129 = vmatprep.subr.bf16.mxu0 %v2435_v22  ;;  %2161 = vmatprep.subr.bf16.mxu1 %v2441_v29 }
 0x65b   :  { %2131 = vmatpush1.bf16.msra.mxu0 %v2447_v38  ;;  %2163 = vmatpush1.bf16.msra.mxu1 %v2451_v39 }
 0x65c   :  { %2133 = vmatprep.subr.bf16.mxu0 %v2453_v42  ;;  %2165 = vmatprep.subr.bf16.mxu1 %v2456_v46 }
 0x65f   :  { %2135 = vmatpush1.bf16.msra.mxu0 %v2462_v50  ;;  %2167 = vmatpush1.bf16.msra.mxu1 %v2466_v51 }
 0x715   :  { %v1335_v19 = vpop.f32.mrb[12].mxu0  ;;  %v1406_v23 = vpop.f32.mrb[12].mxu1 }
 0x716   :  { %v1411_v28 = vadd.f32 %v1335_v19, %v241_v18  ;;  %v1337_v32 = vpop.f32.mrb[13].mxu0  ;;  %v1408_v36 = vpop.f32.mrb[13].mxu1  ;;  %v1413_v58 = vadd.f32 %v1406_v23, %v243_v54  ;;  %v1654_v23 = vld [vmem:[%s2841_s2] ss:$0 sm:$0xff] }
 0x717   :  { %v1412_v40 = vadd.f32 %v1337_v32, %v242_v27  ;;  %v1414_v2 = vadd.f32 %v1408_v36, %v244_v1  ;;  %v1655_v32 = vld [vmem:[%s2841_s2 + $0x1] ss:$0 sm:$0xff] }
 0x718   :  { %v1648_v41 = vmul.f32 -1.442695, %v1411_v28  ;;  %v1650_v3 = vmul.f32 -1.442695, %v1413_v58 }
 0x719   :  { %v1649_v52 = vmul.f32 -1.442695, %v1412_v40 }
 0x71a   :  { %2271 = vpow2.f32 %v1648_v41 }
 0x71b   :  { %2273 = vpow2.f32 %v1649_v52 }
 0x71c   :  { %2275 = vtanh.f32 %v1414_v2 }
 0x71d   :  { %2277 = vpow2.f32 %v1650_v3 }
 0x724   :  { %v2272_v8 = vpop.eup %2271 }
 0x725   :  { %v1424_v17 = vadd.f32 1.0, %v2272_v8  ;;  %v2274_v21 = vpop.eup %2273 }
 0x726   :  { %v1425_v22 = vadd.f32 1.0, %v2274_v21  ;;  %v2276_v29 = vpop.eup %2275 }
 0x727   :  { %2279 = vrcp.f32 %v1424_v17  ;;  %v2278_v38 = vpop.eup %2277 }
 0x728   :  { %2281 = vrcp.f32 %v1425_v22  ;;  %v1426_v50 = vadd.f32 1.0, %v2278_v38 }
 0x72a   :  { %2283 = vrcp.f32 %v1426_v50 }
 0x731   :  { %v2280_v39 = vpop.eup %2279 }
 0x732   :  { %v1435_v42 = vmul.f32 %v2280_v39, %v2276_v29  ;;  %v2282_v46 = vpop.eup %2281 }
 0x733   :  { %v1434_v51 = vmul.f32 %v2282_v46, %v2778_v63 }
 0x734   :  { %v2284_v34 = vpop.eup %2283 }
 0x735   :  { %v1436_v11 = vadd.f32 %v1435_v42, %v1434_v51 }
 0x737   :  { %2285 = vtanh.f32 %v1436_v11 }
 0x741   :  { %v2286_v5 = vpop.eup %2285 }
 0x742   :  { %v1438_v44 = vmul.f32 %v2286_v5, %v2284_v34 }
 0x744   :  { %1504 = vmatmul.mubr.f32.vlgmr.msra.gmra.mrb[14].mxu0 %v1438_v44  ;;  %1575 = vmatmul.mubr.f32.vlgmr.msra.gmra.mrb[14].mxu1 %v1438_v44 }
 0x817   :  { %v1505_v47 = vpop.f32.mrb[14].mxu0  ;;  %v1576_v59 = vpop.f32.mrb[14].mxu1 }
 0x818   :  { %v1581_v7 = vadd.f32 %v1505_v47, %v245_v61  ;;  %v1507_v13 = vpop.f32.mrb[15].mxu0  ;;  %v1578_v57 = vpop.f32.mrb[15].mxu1  ;;  %v1583_v4 = vadd.f32 %v1576_v59, %v247_v62 }
 0x819   :  { %v1582_v20 = vadd.f32 %v1507_v13, %v246_v49  ;;  %v1584_v25 = vadd.f32 %v1578_v57, %v248_v12 }
 0x81a   :  { %v1651_v30 = vmul.f32 -1.442695, %v1581_v7  ;;  %v1653_v6 = vmul.f32 -1.442695, %v1583_v4 }
 0x81b   :  { %v1652_v24 = vmul.f32 -1.442695, %v1582_v20 }
 0x81c   :  { %2287 = vpow2.f32 %v1651_v30 }
 0x81d   :  { %2289 = vpow2.f32 %v1652_v24 }
 0x81e   :  { %2291 = vtanh.f32 %v1584_v25 }
 0x81f   :  { %2293 = vpow2.f32 %v1653_v6 }
 0x826   :  { %v2288_v15 = vpop.eup %2287 }
 0x827   :  { %v1594_v63 = vadd.f32 1.0, %v2288_v15  ;;  %v2290_v33 = vpop.eup %2289 }
 0x828   :  { %v1595_v16 = vadd.f32 1.0, %v2290_v33  ;;  %v2292_v35 = vpop.eup %2291 }
 0x829   :  { %2295 = vrcp.f32 %v1594_v63  ;;  %v2294_v43 = vpop.eup %2293 }
 0x82a   :  { %2297 = vrcp.f32 %v1595_v16  ;;  %v1596_v31 = vadd.f32 1.0, %v2294_v43 }
 0x82c   :  { %2299 = vrcp.f32 %v1596_v31 }
 0x833   :  { %v2296_v0 = vpop.eup %2295 }
 0x834   :  { %v1605_v37 = vmul.f32 %v2296_v0, %v2292_v35  ;;  %v2298_v10 = vpop.eup %2297 }
 0x835   :  { %v1604_v14 = vmul.f32 %v2298_v10, %v1436_v11 }
 0x836   :  { %v2300_v56 = vpop.eup %2299 }
 0x837   :  { %v1606_v18 = vadd.f32 %v1605_v37, %v1604_v14 }
 0x839   :  { %2301 = vtanh.f32 %v1606_v18 }
 0x843   :  { %v2302_v19 = vpop.eup %2301 }
 0x844   :  { %v1608_v27 = vmul.f32 %v2302_v19, %v2300_v56 }
 0x846   :  { %v1614_v28 = vmul.f32 %v1654_v23, %v1608_v27 }
 0x848   :  { %1615 = vadd.xlane.f32.xlu0 %v1614_v28 }
 0x8d5   :  { %v1616_v36 = vpop.xlane.xlu0 %1615 }
 0x8d6   :  { %v1622_v40 = vadd.f32 %v1655_v32, %v1616_v36 }
 0x8d8   :  { %1624 = vst.msk [vmem:[%s2842_s3] sm:$0xff] %vm1623_vm0, %v1622_v40 }
 0x8d9   :  { %1629 = vsyncpa [#allocation3], 1 }

</bundles_post_ra>
